<compile_context>
chip_gen: v5e
topology: v5e:2x2
jax: 0.10.0
libtpu: 0.0.40
codegen_flags: <defaults>
</compile_context>

<pallas_src>
import functools

import jax
import jax.numpy as jnp
from jax.experimental import pallas as pl
from jax.experimental.pallas import tpu as pltpu


# ------------------------------ small helpers -------------------------------

def _round_up(x, m):
    return (x + m - 1) // m * m


def _pick_tiles(m, n, k_pad):
    """Choose (tn, tk) tile sizes for the fused conv GEMM."""
    # N tile: full if <=128 (or not lane-divisible), else split in two
    # lane-aligned halves so the "parallel" grid axis feeds both v7x TCs.
    if n <= 128 or n % 128:
        tn = n
    elif (n // 2) % 128 == 0:
        tn = n // 2
    else:
        tn = 128
    # K tile: tiny-M calls are weight-DMA bound -> one big K step.  Otherwise
    # the largest <=1024 multiple of 128 that divides k_pad (pipelined DMA).
    if m < 128:
        tk = k_pad
    else:
        tk = 128
        for cand in range(128, min(k_pad, 1024) + 1, 128):
            if k_pad % cand == 0:
                tk = cand
    return tn, tk


# ------------------------------ Pallas kernels ------------------------------

def _bn_scale_shift(acc, gamma, beta):
    """Single-pass train-mode BatchNorm over rows (N*H*W) per channel.

    Biased variance via E[x^2]-mean^2, eps=1e-5, applied as one FMA pass
    y*scale + shift (scale = gamma*rsqrt(var+eps), shift = beta - mean*scale).
    """
    m = jnp.mean(acc, axis=0, keepdims=True)
    ms = jnp.mean(acc * acc, axis=0, keepdims=True)
    var = jnp.maximum(ms - m * m, 0.0)
    scale = gamma * jax.lax.rsqrt(var + 1e-5)
    shift = beta - m * scale
    return acc * scale + shift


def _conv_bn_kernel(*refs, relu, has_res, has_ds):
    """K-tiled im2col GEMM + fused BN (+ residual / downsample-conv+BN) + ReLU."""
    if has_ds:
        (a_ref, w_ref, g_ref, b_ref, ad_ref, wd_ref, gd_ref, bd_ref,
         o_ref, acc_ref, accd_ref) = refs
    elif has_res:
        a_ref, w_ref, g_ref, b_ref, r_ref, o_ref, acc_ref = refs
    else:
        a_ref, w_ref, g_ref, b_ref, o_ref, acc_ref = refs

    k = pl.program_id(1)
    part = jnp.dot(a_ref[...], w_ref[...], preferred_element_type=jnp.float32)

    @pl.when(k == 0)
    def _():
        # Initialize with the first partial product: saves one (M,N) zero-fill
        # + add pass per call.
        acc_ref[...] = part
        if has_ds:
            # Downsample 1x1-conv GEMM hoisted to the first K step so its DMA
            # and MXU work overlap the main K loop instead of the epilogue.
            accd_ref[...] = jnp.dot(ad_ref[...], wd_ref[...],
                                    preferred_element_type=jnp.float32)

    @pl.when(k > 0)
    def _():
        acc_ref[...] += part

    @pl.when(k == pl.num_programs(1) - 1)
    def _():
        y = _bn_scale_shift(acc_ref[...], g_ref[...], b_ref[...])
        if has_ds:
            y = y + _bn_scale_shift(accd_ref[...], gd_ref[...], bd_ref[...])
        elif has_res:
            y = y + r_ref[...].astype(jnp.float32)   # residual add in f32
        if relu:
            y = jnp.maximum(y, 0.0)
        o_ref[...] = y.astype(o_ref.dtype)            # bf16 on store only


def fused_conv_bn(a, w, gamma, beta, *, relu=True, residual=None, ds=None):
    """conv (im2col GEMM, bf16 x bf16 -> f32) + train-mode BN + optional
    residual-add (identity, or fused 1x1-conv+BN downsample) + ReLU.

    a: (M, K_pad) bf16 patches, w: (K_pad, N) bf16, gamma/beta: (1, N) f32.
    BN stats need all M rows per channel, so M is one block; the grid is
    (N-tiles [parallel], K-tiles [arbitrary]).  Output is bf16.
    """
    M, k_pad = a.shape
    N = w.shape[1]
    tn, tk = _pick_tiles(M, N, k_pad)
    n_n, nk = N // tn, k_pad // tk

    in_specs = [
        pl.BlockSpec((M, tk), lambda n, k: (0, k)),
        pl.BlockSpec((tk, tn), lambda n, k: (k, n)),
        pl.BlockSpec((1, tn), lambda n, k: (0, n)),
        pl.BlockSpec((1, tn), lambda n, k: (0, n)),
    ]
    args = [a, w, gamma, beta]
    scratch = [pltpu.VMEM((M, tn), jnp.float32)]

    has_ds = ds is not None
    has_res = (residual is not None) and not has_ds
    if has_ds:
        a_ds, w_ds, g_ds, b_ds = ds
        kd = a_ds.shape[1]
        in_specs += [
            pl.BlockSpec((M, kd), lambda n, k: (0, 0)),
            pl.BlockSpec((kd, tn), lambda n, k: (0, n)),
            pl.BlockSpec((1, tn), lambda n, k: (0, n)),
            pl.BlockSpec((1, tn), lambda n, k: (0, n)),
        ]
        args += [a_ds, w_ds, g_ds, b_ds]
        scratch.append(pltpu.VMEM((M, tn), jnp.float32))
    elif has_res:
        in_specs.append(pl.BlockSpec((M, tn), lambda n, k: (0, n)))
        args.append(residual)

    kernel = functools.partial(_conv_bn_kernel, relu=relu,
                               has_res=has_res, has_ds=has_ds)
    return pl.pallas_call(
        kernel,
        out_shape=jax.ShapeDtypeStruct((M, N), jnp.bfloat16),
        grid=(n_n, nk),
        in_specs=in_specs,
        out_specs=pl.BlockSpec((M, tn), lambda n, k: (0, n)),
        scratch_shapes=scratch,
        compiler_params=pltpu.CompilerParams(
            dimension_semantics=("parallel", "arbitrary")),
    )(*args)


def _projector_kernel(x_ref, w1_ref, b1_ref, w2_ref, b2_ref, o_ref):
    # AdaptiveAvgPool2d((1,1)) fused: mean over the spatial axis, then
    # Linear -> ReLU -> Linear, all in f32 (matches the f32 PyTorch head).
    feats = jnp.mean(x_ref[...].astype(jnp.float32), axis=1)
    h = jnp.dot(feats, w1_ref[...], preferred_element_type=jnp.float32) + b1_ref[...]
    h = jnp.maximum(h, 0.0)
    o_ref[...] = jnp.dot(h, w2_ref[...],
                         preferred_element_type=jnp.float32) + b2_ref[...]


def pallas_projector(x_spatial, w1, b1, w2, b2):
    """avgpool + nn.Sequential(Linear(D,D), ReLU, Linear(D,P)) in one kernel."""
    B = x_spatial.shape[0]
    P = w2.shape[1]
    return pl.pallas_call(
        _projector_kernel,
        out_shape=jax.ShapeDtypeStruct((B, P), jnp.float32),
    )(x_spatial, w1, b1, w2, b2)


# ------------------------------ XLA glue ops ---------------------------------

def _im2col(x_nhwc, ksize, stride, pad, k_pad):
    """NHWC im2col in bf16; feature order (C_in, kh, kw) matches PyTorch's
    (O, C_in, kh, kw) weight flattening.  K is zero-padded to k_pad."""
    n = x_nhwc.shape[0]
    xb = x_nhwc.astype(jnp.bfloat16)
    if ksize == 1 and pad == 0:
        patches = xb[:, ::stride, ::stride, :]       # 1x1 conv patches = strided view
    else:
        patches = jax.lax.conv_general_dilated_patches(
            xb, (ksize, ksize), (stride, stride),
            [(pad, pad), (pad, pad)],
            dimension_numbers=("NHWC", "HWIO", "NHWC"))
    _, ho, wo, ck = patches.shape
    a = patches.reshape(n * ho * wo, ck)
    if ck != k_pad:
        a = jnp.pad(a, ((0, 0), (0, k_pad - ck)))
    return a, ho, wo


def maxpool2d_3x3_s2_p1(x4d):
    # TODO(synk): window-max has no FLOPs; kept as plain XLA reduce_window.
    return jax.lax.reduce_window(
        x4d, jnp.asarray(-jnp.inf, x4d.dtype), jax.lax.max,
        window_dimensions=(1, 3, 3, 1), window_strides=(1, 2, 2, 1),
        padding=((0, 0), (1, 1), (1, 1), (0, 0)))


# ------------------------------- parameters ----------------------------------
# Deterministic in-script init (no pretrained checkpoint is loaded).
# Conv weights are stored pre-flattened / pre-transposed as (K_pad, C_out) bf16
# so the forward never transposes, reshapes, pads or casts a weight.

def init_params(key):
    keys = iter(jax.random.split(key, 64))

    def conv_params(o, i, k):
        std = (2.0 / (i * k * k)) ** 0.5
        w_oihw = jax.random.normal(next(keys), (o, i, k, k), jnp.float32) * std
        kdim = i * k * k
        k_pad = _round_up(kdim, 128)
        w2d = w_oihw.reshape(o, kdim).T                      # (K, O), PyTorch order
        w2d = jnp.pad(w2d, ((0, k_pad - kdim), (0, 0)))
        return {"w": w2d.astype(jnp.bfloat16),
                "g": jnp.ones((1, o), jnp.float32),
                "b": jnp.zeros((1, o), jnp.float32)}

    params = {"stem": conv_params(64, 3, 7), "layers": []}
    in_c = 64
    for out_c, stride in [(64, 1), (128, 2), (256, 2), (512, 2)]:
        blocks = []
        for bidx in range(2):
            ic = in_c if bidx == 0 else out_c
            s = stride if bidx == 0 else 1
            blk = {"conv1": conv_params(out_c, ic, 3),
                   "conv2": conv_params(out_c, out_c, 3)}
            if bidx == 0 and (s != 1 or ic != out_c):        # downsample branch
                blk["ds"] = conv_params(out_c, ic, 1)
            blocks.append(blk)
        params["layers"].append(blocks)
        in_c = out_c

    feature_dim, projection_dim = 512, 128
    # Projector stays f32 end-to-end (precision parity with the PyTorch head).
    params["proj_w1"] = (jax.random.normal(next(keys), (feature_dim, feature_dim),
                                           jnp.float32) * 0.02).T
    params["proj_b1"] = jnp.zeros((1, feature_dim), jnp.float32)
    params["proj_w2"] = (jax.random.normal(next(keys), (projection_dim, feature_dim),
                                           jnp.float32) * 0.02).T
    params["proj_b2"] = jnp.zeros((1, projection_dim), jnp.float32)
    return params


# -------------------------------- forward ------------------------------------

def basic_block(x, blk, stride):
    n, h, w, c_in = x.shape
    c1, c2 = blk["conv1"], blk["conv2"]
    c_out = c1["w"].shape[1]

    # conv1 + BN + ReLU (one fused kernel)
    a1, ho, wo = _im2col(x, 3, stride, 1, c1["w"].shape[0])
    hid = fused_conv_bn(a1, c1["w"], c1["g"], c1["b"], relu=True)
    hid4 = hid.reshape(n, ho, wo, c_out)

    # conv2 + BN + residual add (+ fused downsample conv+BN) + ReLU (one kernel)
    a2, _, _ = _im2col(hid4, 3, 1, 1, c2["w"].shape[0])
    if "ds" in blk:
        d = blk["ds"]
        a_ds, _, _ = _im2col(x, 1, stride, 0, d["w"].shape[0])
        out = fused_conv_bn(a2, c2["w"], c2["g"], c2["b"], relu=True,
                            ds=(a_ds, d["w"], d["g"], d["b"]))
    else:
        out = fused_conv_bn(a2, c2["w"], c2["g"], c2["b"], relu=True,
                            residual=x.reshape(n * h * w, c_in))
    return out.reshape(n, ho, wo, c_out)


def contrastive_network_forward(params, x_nchw):
    """ContrastiveNetwork.forward: resnet18 features -> projection head."""
    x = jnp.transpose(x_nchw, (0, 2, 3, 1))                  # NCHW -> NHWC
    n = x.shape[0]

    # stem: conv7x7/2 + BN + ReLU (one fused kernel), then maxpool.
    st = params["stem"]
    a, ho, wo = _im2col(x, 7, 2, 3, st["w"].shape[0])
    x = fused_conv_bn(a, st["w"], st["g"], st["b"], relu=True)
    x = x.reshape(n, ho, wo, st["w"].shape[1])
    x = maxpool2d_3x3_s2_p1(x)

    # 4 stages x 2 BasicBlocks, 2 fused pallas_calls per block.
    for layer, stride in zip(params["layers"], (1, 2, 2, 2)):
        x = basic_block(x, layer[0], stride)
        x = basic_block(x, layer[1], 1)

    # AdaptiveAvgPool2d((1,1)) + flatten + projector, fused in one f32 kernel.
    hw = x.shape[1] * x.shape[2]
    return pallas_projector(x.reshape(n, hw, x.shape[3]),
                            params["proj_w1"], params["proj_b1"],
                            params["proj_w2"], params["proj_b2"])


# ----------------------- one-off numeric sanity check ------------------------

def _check_stem_against_xla_conv(params, x_nchw):
    """Verifies the im2col (C_in, kh, kw) feature ordering / fused BN+ReLU
    against lax.conv_general_dilated (same bf16 operands, f32 accumulation)."""
    st = params["stem"]
    x_nhwc = jnp.transpose(x_nchw, (0, 2, 3, 1)).astype(jnp.bfloat16)
    kdim = 3 * 7 * 7
    w_hwio = st["w"][:kdim].reshape(3, 7, 7, 64).transpose(1, 2, 0, 3)
    ref = jax.lax.conv_general_dilated(
        x_nhwc, w_hwio, (2, 2), [(3, 3), (3, 3)],
        dimension_numbers=("NHWC", "HWIO", "NHWC"),
        preferred_element_type=jnp.float32)
    m = jnp.mean(ref, axis=(0, 1, 2), keepdims=True)
    v = jnp.mean(jnp.square(ref - m), axis=(0, 1, 2), keepdims=True)
    ref = jnp.maximum((ref - m) * jax.lax.rsqrt(v + 1e-5), 0.0)   # gamma=1, beta=0

    a, ho, wo = _im2col(x_nhwc, 7, 2, 3, st["w"].shape[0])
    got = fused_conv_bn(a, st["w"], st["g"], st["b"], relu=True)
    got = got.reshape(ref.shape).astype(jnp.float32)
    err = float(jnp.max(jnp.abs(got - ref)))
    assert err < 0.1, f"stem conv+BN mismatch vs XLA conv (max |err| = {err})"


if __name__ == "__main__":
    key = jax.random.PRNGKey(0)
    pkey, xkey = jax.random.split(key)
    params = init_params(pkey)
    # NCHW image batch like the PyTorch module (32x32 keeps every stage non-degenerate).
    x = jax.random.normal(xkey, (2, 3, 32, 32), jnp.float32)

    # Numeric check of the im2col ordering + fused BN epilogue (bf16-tolerance).
    _check_stem_against_xla_conv(params, x)

    fwd = jax.jit(contrastive_network_forward)
    out = fwd(params, x)
    jax.block_until_ready(out)

    assert out.shape == (2, 128), out.shape
    assert out.dtype == jnp.float32
    assert bool(jnp.all(jnp.isfinite(out)))
    print("KERNEL_OK")
</pallas_src>

<mosaic_0001>
module attributes {stable_mosaic.version = 11 : i64} {
  func.func @_conv_bn_kernel(%arg0: i32, %arg1: i32, %arg2: memref<512x256xbf16, #tpu.memory_space<vmem>>, %arg3: memref<256x64xbf16, #tpu.memory_space<vmem>>, %arg4: memref<1x64xf32, #tpu.memory_space<vmem>>, %arg5: memref<1x64xf32, #tpu.memory_space<vmem>>, %arg6: memref<512x64xbf16, #tpu.memory_space<vmem>>, %arg7: memref<512x64xf32, #tpu.memory_space<vmem>>) attributes {dimension_semantics = [#tpu.dimension_semantics<parallel>, #tpu.dimension_semantics<arbitrary>], iteration_bounds = array<i64: 1, 1>, scalar_prefetch = 0 : i64, scratch_operands = 1 : i64, tpu.core_type = #tpu.core_type<tc>, window_params = [{transform_indices = @transform_0, window_bounds = array<i64: 512, 256>}, {transform_indices = @transform_1, window_bounds = array<i64: 256, 64>}, {transform_indices = @transform_2, window_bounds = array<i64: 1, 64>}, {transform_indices = @transform_3, window_bounds = array<i64: 1, 64>}, {transform_indices = @transform_4, window_bounds = array<i64: 512, 64>}]} {
    %c0 = arith.constant 0 : index
    %c0_0 = arith.constant 0 : index
    %0 = vector.load %arg2[%c0, %c0_0] : memref<512x256xbf16, #tpu.memory_space<vmem>>, vector<512x256xbf16>
    %c0_1 = arith.constant 0 : index
    %c0_2 = arith.constant 0 : index
    %1 = vector.load %arg3[%c0_1, %c0_2] : memref<256x64xbf16, #tpu.memory_space<vmem>>, vector<256x64xbf16>
    %cst = arith.constant dense<0.000000e+00> : vector<512x64xf32>
    %2 = tpu.matmul %0, %1, %cst {dimension_numbers = #tpu.dot_dimension_numbers<[1], [0], [0], [1], [0, 0, 1, 1], [], []>} : vector<512x256xbf16>, vector<256x64xbf16>, vector<512x64xf32> -> vector<512x64xf32>
    %c0_i32 = arith.constant 0 : i32
    %3 = arith.cmpi eq, %arg1, %c0_i32 : i32
    %4 = arith.extui %3 : i1 to i32
    %c0_i32_3 = arith.constant 0 : i32
    %5 = arith.cmpi ne, %4, %c0_i32_3 : i32
    scf.if %5 {
      %c0_8 = arith.constant 0 : index
      %c0_9 = arith.constant 0 : index
      %12 = vector.load %arg7[%c0_8, %c0_9] : memref<512x64xf32, #tpu.memory_space<vmem>>, vector<512x64xf32>
      tpu.vector_store %arg7[%c0_8, %c0_9], %2 {strides = array<i32>} : memref<512x64xf32, #tpu.memory_space<vmem>>, vector<512x64xf32>,
    } else {
    }
    %c0_i32_4 = arith.constant 0 : i32
    %6 = arith.cmpi sgt, %arg1, %c0_i32_4 : i32
    %7 = arith.extui %6 : i1 to i32
    %c0_i32_5 = arith.constant 0 : i32
    %8 = arith.cmpi ne, %7, %c0_i32_5 : i32
    scf.if %8 {
      %c0_8 = arith.constant 0 : index
      %c0_9 = arith.constant 0 : index
      %12 = vector.load %arg7[%c0_8, %c0_9] : memref<512x64xf32, #tpu.memory_space<vmem>>, vector<512x64xf32>
      %13 = arith.addf %12, %2 : vector<512x64xf32>
      %c0_10 = arith.constant 0 : index
      %c0_11 = arith.constant 0 : index
      %14 = vector.load %arg7[%c0_10, %c0_11] : memref<512x64xf32, #tpu.memory_space<vmem>>, vector<512x64xf32>
      tpu.vector_store %arg7[%c0_10, %c0_11], %13 {strides = array<i32>} : memref<512x64xf32, #tpu.memory_space<vmem>>, vector<512x64xf32>,
    } else {
    }
    %c0_i32_6 = arith.constant 0 : i32
    %9 = arith.cmpi eq, %arg1, %c0_i32_6 : i32
    %10 = arith.extui %9 : i1 to i32
    %c0_i32_7 = arith.constant 0 : i32
    %11 = arith.cmpi ne, %10, %c0_i32_7 : i32
    scf.if %11 {
      %c0_8 = arith.constant 0 : index
      %c0_9 = arith.constant 0 : index
      %12 = vector.load %arg7[%c0_8, %c0_9] : memref<512x64xf32, #tpu.memory_space<vmem>>, vector<512x64xf32>
      %c0_10 = arith.constant 0 : index
      %c0_11 = arith.constant 0 : index
      %13 = vector.load %arg4[%c0_10, %c0_11] : memref<1x64xf32, #tpu.memory_space<vmem>>, vector<1x64xf32>
      %c0_12 = arith.constant 0 : index
      %c0_13 = arith.constant 0 : index
      %14 = vector.load %arg5[%c0_12, %c0_13] : memref<1x64xf32, #tpu.memory_space<vmem>>, vector<1x64xf32>
      %cst_14 = arith.constant dense<0.000000e+00> : vector<64xf32>
      %15 = vector.multi_reduction <add>, %12, %cst_14 [0] : vector<512x64xf32> to vector<64xf32>
      %16 = vector.shape_cast %15 : vector<64xf32> to vector<1x64xf32>
      %cst_15 = arith.constant 5.120000e+02 : f32
      %17 = vector.broadcast %cst_15 : f32 to vector<1x64xf32>
      %18 = arith.divf %16, %17 : vector<1x64xf32>
      %19 = arith.mulf %12, %12 : vector<512x64xf32>
      %cst_16 = arith.constant dense<0.000000e+00> : vector<64xf32>
      %20 = vector.multi_reduction <add>, %19, %cst_16 [0] : vector<512x64xf32> to vector<64xf32>
      %21 = vector.shape_cast %20 : vector<64xf32> to vector<1x64xf32>
      %cst_17 = arith.constant 5.120000e+02 : f32
      %22 = vector.broadcast %cst_17 : f32 to vector<1x64xf32>
      %23 = arith.divf %21, %22 : vector<1x64xf32>
      %24 = arith.mulf %18, %18 : vector<1x64xf32>
      %25 = arith.subf %23, %24 : vector<1x64xf32>
      %cst_18 = arith.constant 0.000000e+00 : f32
      %26 = vector.broadcast %cst_18 : f32 to vector<1x64xf32>
      %27 = arith.maximumf %25, %26 : vector<1x64xf32>
      %cst_19 = arith.constant 9.99999974E-6 : f32
      %28 = vector.broadcast %cst_19 : f32 to vector<1x64xf32>
      %29 = arith.addf %27, %28 : vector<1x64xf32>
      %30 = math.rsqrt %29 : vector<1x64xf32>
      %31 = arith.mulf %13, %30 : vector<1x64xf32>
      %32 = arith.mulf %18, %31 : vector<1x64xf32>
      %33 = arith.subf %14, %32 : vector<1x64xf32>
      %34 = vector.broadcast %31 : vector<1x64xf32> to vector<512x64xf32>
      %35 = arith.mulf %12, %34 : vector<512x64xf32>
      %36 = vector.broadcast %33 : vector<1x64xf32> to vector<512x64xf32>
      %37 = arith.addf %35, %36 : vector<512x64xf32>
      %cst_20 = arith.constant 0.000000e+00 : f32
      %38 = vector.broadcast %cst_20 : f32 to vector<512x64xf32>
      %39 = arith.maximumf %37, %38 : vector<512x64xf32>
      %40 = arith.truncf %39 : vector<512x64xf32> to vector<512x64xbf16>
      %c0_21 = arith.constant 0 : index
      %c0_22 = arith.constant 0 : index
      %41 = vector.load %arg6[%c0_21, %c0_22] : memref<512x64xbf16, #tpu.memory_space<vmem>>, vector<512x64xbf16>
      tpu.vector_store %arg6[%c0_21, %c0_22], %40 {strides = array<i32>} : memref<512x64xbf16, #tpu.memory_space<vmem>>, vector<512x64xbf16>,
    } else {
    }
    return
  }
  func.func @transform_0(%arg0: i32, %arg1: i32) -> (i32, i32) {
    %c0_i32 = arith.constant 0 : i32
    %c0_i32_0 = arith.constant 0 : i32
    return %c0_i32, %arg1 : i32, i32
  }
  func.func @transform_1(%arg0: i32, %arg1: i32) -> (i32, i32) {
    %c0_i32 = arith.constant 0 : i32
    return %arg1, %arg0 : i32, i32
  }
  func.func @transform_2(%arg0: i32, %arg1: i32) -> (i32, i32) {
    %c0_i32 = arith.constant 0 : i32
    %c0_i32_0 = arith.constant 0 : i32
    return %c0_i32, %arg0 : i32, i32
  }
  func.func @transform_3(%arg0: i32, %arg1: i32) -> (i32, i32) {
    %c0_i32 = arith.constant 0 : i32
    %c0_i32_0 = arith.constant 0 : i32
    return %c0_i32, %arg0 : i32, i32
  }
  func.func @transform_4(%arg0: i32, %arg1: i32) -> (i32, i32) {
    %c0_i32 = arith.constant 0 : i32
    %c0_i32_0 = arith.constant 0 : i32
    return %c0_i32, %arg0 : i32, i32
  }
}

</mosaic_0001>

<bundles_post_ra>
// kernel: tpu_custom_call.1
= control target key start
LH: loop header
LB: loop body
LE: loop exit
PB: predicated region body
PF: predicated region fallthrough
CT: control target
= control target key end

     0   :  { %9 = vsyncpa [#allocation4], 0  ;;  %s2357_s18 = smov [#allocation3]   ;;  %s2358_s20 = smov 128   ;;  %s3404_s0 = inlined_call_operand.hbm [shape: bf16[512,256], index: 0, kind: input, shape index: {}]   ;;  %s3405_s1 = inlined_call_operand.vmem [shape: bf16[256,64], index: 1, kind: input, shape index: {}]   ;;  %s3406_s2 = inlined_call_operand.vmem [shape: f32[1,64], index: 2, kind: input, shape index: {}]   ;;  %s3407_s3 = inlined_call_operand.vmem [shape: f32[1,64], index: 3, kind: input, shape index: {}]   ;;  %s3408_s4 = inlined_call_operand.vmem [shape: bf16[512,64], index: 4, kind: output, shape index: {}]  }
   0x1   :  { %s14_s17 = sshll.u32 %s3404_s0, 4  ;;  %s16_s19 = sshll.u32 %s2357_s18, 4  ;;  %s15_s17 = int_to_ptr.hbm [resolvable:$true] %s14_s17  ;;  %s17_s19 = int_to_ptr.vmem [resolvable:$true] %s16_s19 }
   0x2   :  { %s2359_s21 = smov 8  }
   0x3   :  { %22 = dma.hbm_to_vmem [thread:$0]  %s15_s17, 8192, %s17_s19, [#allocation4], %s2358_s20, %s2358_s20, %s2359_s21  }
   0x4   :  { %2355 = dma.done.wait [#allocation4], 8192  }
   0x5   :  { %2356 = vsyncadd [#allocation4], 4294959104  ;;  %v2298_v0 = vld [vmem:[%s3405_s1 + $0x38] sm:$0xff]  ;;  %v2297_v2 = vld [vmem:[%s3405_s1 + $0x30] sm:$0xff]  ;;  %vm887_vm0 = vcmask 523264   ;;  %vm1837_vm5 = vcmask 519168  }
   0x6   :  { %v2306_v1 = vld [vmem:[%s3405_s1 + $0x78] sm:$0xff]  ;;  %545 = vmatpush.bf16.msra.mxu0 %v2298_v0  ;;  %v2305_v3 = vld [vmem:[%s3405_s1 + $0x70] sm:$0xff]  ;;  %2307 = vmatpush.bf16.msra.mxu2 %v2298_v0  ;;  %v2296_v4 = vld [vmem:[%s3405_s1 + $0x28] sm:$0xff] }
   0x7   :  { %714 = vmatpush.bf16.msra.mxu1 %v2306_v1  ;;  %2315 = vmatpush.bf16.msra.mxu3 %v2306_v1  ;;  %v2304_v5 = vld [vmem:[%s3405_s1 + $0x68] sm:$0xff]  ;;  %v2295_v6 = vld [vmem:[%s3405_s1 + $0x20] sm:$0xff]  ;;  %v2294_v8 = vld [vmem:[%s3405_s1 + $0x18] sm:$0xff] }
   0x8   :  { %v2303_v7 = vld [vmem:[%s3405_s1 + $0x60] sm:$0xff]  ;;  %v2302_v9 = vld [vmem:[%s3405_s1 + $0x58] sm:$0xff]  ;;  %v2293_v10 = vld [vmem:[%s3405_s1 + $0x10] sm:$0xff] }
   0x9   :  { %v2301_v11 = vld [vmem:[%s3405_s1 + $0x50] sm:$0xff]  ;;  %v2292_v12 = vld [vmem:[%s3405_s1 + $0x8] sm:$0xff]  ;;  %v2291_v14 = vld [vmem:[%s3405_s1] sm:$0xff] }
   0xa   :  { %546 = vmatpush.bf16.msra.mxu0 %v2297_v2  ;;  %2308 = vmatpush.bf16.msra.mxu2 %v2297_v2  ;;  %v2300_v13 = vld [vmem:[%s3405_s1 + $0x48] sm:$0xff]  ;;  %v2299_v15 = vld [vmem:[%s3405_s1 + $0x40] sm:$0xff]  ;;  %v1917_v22 = vld [vmem:[#allocation3 + $0x10] sm:$0xf] }
   0xb   :  { %715 = vmatpush.bf16.msra.mxu1 %v2305_v3  ;;  %2316 = vmatpush.bf16.msra.mxu3 %v2305_v3  ;;  %v1909_v16 = vld [vmem:[#allocation3] sm:$0xf]  ;;  %v2228_v17 = vld [vmem:[#allocation3 + $0x4] sm:$0xf0]  ;;  %v2227_v18 = vld [vmem:[#allocation3 + $0x4] sm:$0xf] }
   0xc   :  { %v1911_v19 = vld [vmem:[#allocation3 + $0x8] sm:$0xf0]  ;;  %v1910_v20 = vor.u32 %v2228_v17, %v1909_v16  ;;  %v2230_v23 = vld [vmem:[#allocation3 + $0x14] sm:$0xf0]  ;;  %v2229_v24 = vld [vmem:[#allocation3 + $0x14] sm:$0xf] }
   0xd   :  { %v1914_v21 = vor.u32 %v2227_v18, %v1911_v19  ;;  %v1919_v25 = vld [vmem:[#allocation3 + $0x18] sm:$0xf0]  ;;  %v1918_v26 = vor.u32 %v2230_v23, %v1917_v22  ;;  %v2037_v28 = vld [vmem:[#allocation3 + $0x100] sm:$0xf]  ;;  %v2260_v29 = vld [vmem:[#allocation3 + $0x104] sm:$0xf0] }
   0xe   :  { %547 = vmatpush.bf16.msra.mxu0 %v2296_v4  ;;  %2309 = vmatpush.bf16.msra.mxu2 %v2296_v4  ;;  %v1922_v27 = vor.u32 %v2229_v24, %v1919_v25  ;;  %v2259_v30 = vld [vmem:[#allocation3 + $0x104] sm:$0xf]  ;;  %v2038_v31 = vor.u32 %v2260_v29, %v2037_v28  ;;  %v2039_v32 = vld [vmem:[#allocation3 + $0x108] sm:$0xf0]  ;;  %v1925_v34 = vld [vmem:[#allocation3 + $0x20] sm:$0xf] }
   0xf   :  { %716 = vmatpush.bf16.msra.mxu1 %v2304_v5  ;;  %2317 = vmatpush.bf16.msra.mxu3 %v2304_v5  ;;  %v2042_v33 = vor.u32 %v2259_v30, %v2039_v32  ;;  %v2232_v35 = vld [vmem:[#allocation3 + $0x24] sm:$0xf0]  ;;  %v2231_v36 = vld [vmem:[#allocation3 + $0x24] sm:$0xf]  ;;  %v1927_v37 = vld [vmem:[#allocation3 + $0x28] sm:$0xf0] }
  0x10   :  { %v1926_v38 = vor.u32 %v2232_v35, %v1925_v34  ;;  %v1930_v39 = vor.u32 %v2231_v36, %v1927_v37  ;;  %v2045_v40 = vld [vmem:[#allocation3 + $0x110] sm:$0xf]  ;;  %v2262_v41 = vld [vmem:[#allocation3 + $0x114] sm:$0xf0]  ;;  %v2261_v42 = vld [vmem:[#allocation3 + $0x114] sm:$0xf] }
  0x11   :  { %v2046_v43 = vor.u32 %v2262_v41, %v2045_v40  ;;  %v2047_v44 = vld [vmem:[#allocation3 + $0x118] sm:$0xf0]  ;;  %v1933_v46 = vld [vmem:[#allocation3 + $0x30] sm:$0xf]  ;;  %v2234_v47 = vld [vmem:[#allocation3 + $0x34] sm:$0xf0] }
  0x12   :  { %548 = vmatpush.bf16.msra.mxu0 %v2295_v6  ;;  %2310 = vmatpush.bf16.msra.mxu2 %v2295_v6  ;;  %v2050_v45 = vor.u32 %v2261_v42, %v2047_v44  ;;  %v2233_v48 = vld [vmem:[#allocation3 + $0x34] sm:$0xf]  ;;  %v1935_v49 = vld [vmem:[#allocation3 + $0x38] sm:$0xf0]  ;;  %v1934_v50 = vor.u32 %v2234_v47, %v1933_v46  ;;  %v2053_v52 = vld [vmem:[#allocation3 + $0x120] sm:$0xf] }
  0x13   :  { %717 = vmatpush.bf16.msra.mxu1 %v2303_v7  ;;  %2318 = vmatpush.bf16.msra.mxu3 %v2303_v7  ;;  %v1938_v51 = vor.u32 %v2233_v48, %v1935_v49  ;;  %v2264_v53 = vld [vmem:[#allocation3 + $0x124] sm:$0xf0]  ;;  %v2263_v54 = vld [vmem:[#allocation3 + $0x124] sm:$0xf]  ;;  %v2055_v56 = vld [vmem:[#allocation3 + $0x128] sm:$0xf0] }
  0x14   :  { %v2054_v55 = vor.u32 %v2264_v53, %v2053_v52  ;;  %v2058_v57 = vor.u32 %v2263_v54, %v2055_v56  ;;  %v1941_v58 = vld [vmem:[#allocation3 + $0x40] sm:$0xf]  ;;  %v2236_v59 = vld [vmem:[#allocation3 + $0x44] sm:$0xf0]  ;;  %v2235_v60 = vld [vmem:[#allocation3 + $0x44] sm:$0xf] }
  0x15   :  { %v1943_v61 = vld [vmem:[#allocation3 + $0x48] sm:$0xf0]  ;;  %v1942_v62 = vor.u32 %v2236_v59, %v1941_v58  ;;  %v2061_v0 = vld [vmem:[#allocation3 + $0x130] sm:$0xf]  ;;  %v2266_v1 = vld [vmem:[#allocation3 + $0x134] sm:$0xf0] }
  0x16   :  { %549 = vmatpush.bf16.msra.mxu0 %v2294_v8  ;;  %2311 = vmatpush.bf16.msra.mxu2 %v2294_v8  ;;  %v1946_v63 = vor.u32 %v2235_v60, %v1943_v61  ;;  %v2265_v2 = vld [vmem:[#allocation3 + $0x134] sm:$0xf]  ;;  %v2062_v3 = vor.u32 %v2266_v1, %v2061_v0  ;;  %v2063_v4 = vld [vmem:[#allocation3 + $0x138] sm:$0xf0]  ;;  %v1949_v6 = vld [vmem:[#allocation3 + $0x50] sm:$0xf] }
  0x17   :  { %718 = vmatpush.bf16.msra.mxu1 %v2302_v9  ;;  %2319 = vmatpush.bf16.msra.mxu3 %v2302_v9  ;;  %v2066_v5 = vor.u32 %v2265_v2, %v2063_v4  ;;  %v2238_v7 = vld [vmem:[#allocation3 + $0x54] sm:$0xf0]  ;;  %v2237_v8 = vld [vmem:[#allocation3 + $0x54] sm:$0xf]  ;;  %v1951_v9 = vld [vmem:[#allocation3 + $0x58] sm:$0xf0] }
  0x18   :  { %v2071_v16 = vld [vmem:[#allocation3 + $0x148] sm:$0xf0]  ;;  %v1957_v18 = vld [vmem:[#allocation3 + $0x60] sm:$0xf]  ;;  %v2240_v19 = vld [vmem:[#allocation3 + $0x64] sm:$0xf0] }
  0x19   :  { %v1958_v22 = vor.u32 %v2240_v19, %v1957_v18  ;;  %v2077_v24 = vld [vmem:[#allocation3 + $0x150] sm:$0xf]  ;;  %v2270_v25 = vld [vmem:[#allocation3 + $0x154] sm:$0xf0]  ;;  %v2079_v28 = vld [vmem:[#allocation3 + $0x158] sm:$0xf0] }
  0x1a   :  { %550 = vmatpush.bf16.msra.mxu0 %v2293_v10  ;;  %2312 = vmatpush.bf16.msra.mxu2 %v2293_v10  ;;  %v1950_v10 = vor.u32 %v2238_v7, %v1949_v6  ;;  %v1965_v30 = vld [vmem:[#allocation3 + $0x70] sm:$0xf]  ;;  %v2241_v32 = vld [vmem:[#allocation3 + $0x74] sm:$0xf]  ;;  %v2085_v36 = vld [vmem:[#allocation3 + $0x160] sm:$0xf] }
  0x1b   :  { %719 = vmatpush.bf16.msra.mxu1 %v2301_v11  ;;  %2320 = vmatpush.bf16.msra.mxu3 %v2301_v11  ;;  %v1954_v11 = vor.u32 %v2237_v8, %v1951_v9  ;;  %v2272_v37 = vld [vmem:[#allocation3 + $0x164] sm:$0xf0]  ;;  %v2087_v40 = vld [vmem:[#allocation3 + $0x168] sm:$0xf0]  ;;  %v1973_v42 = vld [vmem:[#allocation3 + $0x80] sm:$0xf] }
  0x1c   :  { %v2243_v44 = vld [vmem:[#allocation3 + $0x84] sm:$0xf]  ;;  %v2274_v52 = vld [vmem:[#allocation3 + $0x174] sm:$0xf0]  ;;  %v2273_v53 = vld [vmem:[#allocation3 + $0x174] sm:$0xf] }
  0x1d   :  { %v1981_v60 = vld [vmem:[#allocation3 + $0x90] sm:$0xf]  ;;  %v2246_v61 = vld [vmem:[#allocation3 + $0x94] sm:$0xf0]  ;;  %v2276_v6 = vld [vmem:[#allocation3 + $0x184] sm:$0xf0] }
  0x1e   :  { %551 = vmatpush.bf16.msra.mxu0 %v2292_v12  ;;  %2313 = vmatpush.bf16.msra.mxu2 %v2292_v12  ;;  %v2069_v12 = vld [vmem:[#allocation3 + $0x140] sm:$0xf]  ;;  %v1982_v0 = vor.u32 %v2246_v61, %v1981_v60  ;;  %v2275_v8 = vld [vmem:[#allocation3 + $0x184] sm:$0xf]  ;;  %v2103_v9 = vld [vmem:[#allocation3 + $0x188] sm:$0xf0] }
  0x1f   :  { %720 = vmatpush.bf16.msra.mxu1 %v2300_v13  ;;  %2321 = vmatpush.bf16.msra.mxu3 %v2300_v13  ;;  %v2268_v13 = vld [vmem:[#allocation3 + $0x144] sm:$0xf0]  ;;  %v2247_v18 = vld [vmem:[#allocation3 + $0xa4] sm:$0xf]  ;;  %v1991_v19 = vld [vmem:[#allocation3 + $0xa8] sm:$0xf0] }
  0x22   :  { %552 = vmatpush.bf16.msra.mxu0 %v2291_v14  ;;  %2314 = vmatpush.bf16.msra.mxu2 %v2291_v14  ;;  %v2267_v14 = vld [vmem:[#allocation3 + $0x144] sm:$0xf] }
  0x23   :  { %721 = vmatpush.bf16.msra.mxu1 %v2299_v15  ;;  %2322 = vmatpush.bf16.msra.mxu3 %v2299_v15  ;;  %v2070_v15 = vor.u32 %v2268_v13, %v2069_v12  ;;  %v2074_v17 = vor.u32 %v2267_v14, %v2071_v16  ;;  %v1989_v16 = vld [vmem:[#allocation3 + $0xa0] sm:$0xf] }
  0x25   :  { %553 = vmatmul.bf16.vlgmr.msra.gmra.mxu0 %v1910_v20  ;;  %633 = vmatmul.bf16.vlgmr.msra.gmra.mxu2 %v2038_v31  ;;  %v2239_v20 = vld [vmem:[#allocation3 + $0x64] sm:$0xf]  ;;  %v2242_v31 = vld [vmem:[#allocation3 + $0x74] sm:$0xf0] }
  0x26   :  { %722 = vmatmul.bf16.vlgmr.msra.gmra.mxu1 %v1914_v21  ;;  %802 = vmatmul.bf16.vlgmr.msra.gmra.mxu3 %v2042_v33  ;;  %v1959_v21 = vld [vmem:[#allocation3 + $0x68] sm:$0xf0]  ;;  %v1967_v33 = vld [vmem:[#allocation3 + $0x78] sm:$0xf0]  ;;  %v1966_v34 = vor.u32 %v2242_v31, %v1965_v30  ;;  %v2278_v30 = vld [vmem:[#allocation3 + $0x194] sm:$0xf0] }
  0x27   :  { %v1962_v23 = vor.u32 %v2239_v20, %v1959_v21  ;;  %v1970_v35 = vor.u32 %v2241_v32, %v1967_v33  ;;  %v1994_v21 = vor.u32 %v2247_v18, %v1991_v19  ;;  %v2277_v32 = vld [vmem:[#allocation3 + $0x194] sm:$0xf]  ;;  %v2111_v33 = vld [vmem:[#allocation3 + $0x198] sm:$0xf0] }
  0x35   :  { %558 = vmatmul.bf16.gmra.mxu0 %v1918_v26  ;;  %638 = vmatmul.bf16.gmra.mxu2 %v2046_v43  ;;  %v2269_v26 = vld [vmem:[#allocation3 + $0x154] sm:$0xf]  ;;  %v2244_v43 = vld [vmem:[#allocation3 + $0x84] sm:$0xf0] }
  0x36   :  { %727 = vmatmul.bf16.gmra.mxu1 %v1922_v27  ;;  %807 = vmatmul.bf16.gmra.mxu3 %v2050_v45  ;;  %v2078_v27 = vor.u32 %v2270_v25, %v2077_v24  ;;  %v2082_v29 = vor.u32 %v2269_v26, %v2079_v28  ;;  %v1975_v45 = vld [vmem:[#allocation3 + $0x88] sm:$0xf0]  ;;  %v1974_v46 = vor.u32 %v2244_v43, %v1973_v42  ;;  %v2249_v42 = vld [vmem:[#allocation3 + $0xb4] sm:$0xf]  ;;  %v1999_v43 = vld [vmem:[#allocation3 + $0xb8] sm:$0xf0] }
  0x37   :  { %v1978_v47 = vor.u32 %v2243_v44, %v1975_v45  ;;  %v2002_v45 = vor.u32 %v2249_v42, %v1999_v43 }
  0x45   :  { %563 = vmatmul.bf16.gmra.mxu0 %v1926_v38  ;;  %643 = vmatmul.bf16.gmra.mxu2 %v2054_v55  ;;  %v2271_v38 = vld [vmem:[#allocation3 + $0x164] sm:$0xf]  ;;  %v2095_v55 = vld [vmem:[#allocation3 + $0x178] sm:$0xf0] }
  0x46   :  { %732 = vmatmul.bf16.gmra.mxu1 %v1930_v39  ;;  %812 = vmatmul.bf16.gmra.mxu3 %v2058_v57  ;;  %v2086_v39 = vor.u32 %v2272_v37, %v2085_v36  ;;  %v2090_v41 = vor.u32 %v2271_v38, %v2087_v40  ;;  %v2098_v56 = vor.u32 %v2273_v53, %v2095_v55  ;;  %v1997_v40 = vld [vmem:[#allocation3 + $0xb0] sm:$0xf]  ;;  %v2117_v53 = vld [vmem:[#allocation3 + $0x1a0] sm:$0xf] }
  0x55   :  { %568 = vmatmul.bf16.gmra.mxu0 %v1934_v50  ;;  %648 = vmatmul.bf16.gmra.mxu2 %v2062_v3 }
  0x56   :  { %737 = vmatmul.bf16.gmra.mxu1 %v1938_v51  ;;  %817 = vmatmul.bf16.gmra.mxu3 %v2066_v5  ;;  %v2093_v51 = vld [vmem:[#allocation3 + $0x170] sm:$0xf]  ;;  %v2101_v5 = vld [vmem:[#allocation3 + $0x180] sm:$0xf] }
  0x57   :  { %v2094_v54 = vor.u32 %v2274_v52, %v2093_v51  ;;  %v2102_v7 = vor.u32 %v2276_v6, %v2101_v5 }
  0x65   :  { %573 = vmatmul.bf16.gmra.mxu0 %v1942_v62  ;;  %653 = vmatmul.bf16.gmra.mxu2 %v2070_v15  ;;  %v2245_v62 = vld [vmem:[#allocation3 + $0x94] sm:$0xf] }
  0x66   :  { %742 = vmatmul.bf16.gmra.mxu1 %v1946_v63  ;;  %822 = vmatmul.bf16.gmra.mxu3 %v2074_v17  ;;  %v1983_v63 = vld [vmem:[#allocation3 + $0x98] sm:$0xf0]  ;;  %v2248_v17 = vld [vmem:[#allocation3 + $0xa4] sm:$0xf0] }
  0x67   :  { %v1986_v1 = vor.u32 %v2245_v62, %v1983_v63  ;;  %v1990_v20 = vor.u32 %v2248_v17, %v1989_v16  ;;  %v2281_v16 = vld [vmem:[#allocation3 + $0x1b4] sm:$0xf]  ;;  %v2127_v17 = vld [vmem:[#allocation3 + $0x1b8] sm:$0xf0] }
  0x68   :  { %v2130_v18 = vor.u32 %v2281_v16, %v2127_v17 }
  0x75   :  { %578 = vmatmul.bf16.gmra.mxu0 %v1950_v10  ;;  %658 = vmatmul.bf16.gmra.mxu2 %v2078_v27  ;;  %v2106_v10 = vor.u32 %v2275_v8, %v2103_v9 }
  0x76   :  { %747 = vmatmul.bf16.gmra.mxu1 %v1954_v11  ;;  %827 = vmatmul.bf16.gmra.mxu3 %v2082_v29  ;;  %v2109_v29 = vld [vmem:[#allocation3 + $0x190] sm:$0xf] }
  0x77   :  { %v2110_v31 = vor.u32 %v2278_v30, %v2109_v29 }
  0x85   :  { %583 = vmatmul.bf16.gmra.mxu0 %v1958_v22  ;;  %663 = vmatmul.bf16.gmra.mxu2 %v2086_v39 }
  0x86   :  { %752 = vmatmul.bf16.gmra.mxu1 %v1962_v23  ;;  %832 = vmatmul.bf16.gmra.mxu3 %v2090_v41  ;;  %v2250_v41 = vld [vmem:[#allocation3 + $0xb4] sm:$0xf0] }
  0x87   :  { %v1998_v44 = vor.u32 %v2250_v41, %v1997_v40  ;;  %v2283_v40 = vld [vmem:[#allocation3 + $0x1c4] sm:$0xf]  ;;  %v2135_v41 = vld [vmem:[#allocation3 + $0x1c8] sm:$0xf0] }
  0x88   :  { %v2138_v42 = vor.u32 %v2283_v40, %v2135_v41  ;;  %v2290_v40 = vld [vmem:[#allocation3 + $0x1f4] sm:$0xf0] }
  0x95   :  { %588 = vmatmul.bf16.gmra.mxu0 %v1966_v34  ;;  %668 = vmatmul.bf16.gmra.mxu2 %v2094_v54  ;;  %v2114_v34 = vor.u32 %v2277_v32, %v2111_v33  ;;  %v2280_v54 = vld [vmem:[#allocation3 + $0x1a4] sm:$0xf0] }
  0x96   :  { %757 = vmatmul.bf16.gmra.mxu1 %v1970_v35  ;;  %837 = vmatmul.bf16.gmra.mxu3 %v2098_v56  ;;  %v2118_v55 = vor.u32 %v2280_v54, %v2117_v53  ;;  %v2279_v56 = vld [vmem:[#allocation3 + $0x1a4] sm:$0xf] }
  0xa2   :  { %v554_v48 = vpop.f32.mrf.mxu0 }
  0xa3   :  { %v723_v49 = vpop.f32.mrf.mxu1 }
  0xa4   :  { %v724_v50 = vadd.f32 %v723_v49, %v554_v48 }
  0xa5   :  { %593 = vmatmul.bf16.gmra.mxu0 %v1974_v46  ;;  %673 = vmatmul.bf16.gmra.mxu2 %v2102_v7 }
  0xa6   :  { %888 = vst.msk [vmem:[#allocation2] sm:$0xff] %vm887_vm0, %v724_v50  ;;  %762 = vmatmul.bf16.gmra.mxu1 %v1978_v47  ;;  %842 = vmatmul.bf16.gmra.mxu3 %v2106_v10 }
  0xa8   :  { %v634_v14 = vpop.f32.mrf.mxu2 }
  0xa9   :  { %v803_v15 = vpop.f32.mrf.mxu3 }
  0xaa   :  { %v556_v57 = vpop.f32.mrf.mxu0  ;;  %v804_v25 = vadd.f32 %v803_v15, %v634_v14  ;;  %v2282_v14 = vld [vmem:[#allocation3 + $0x1b4] sm:$0xf0] }
  0xab   :  { %v725_v58 = vpop.f32.mrf.mxu1 }
  0xac   :  { %v726_v59 = vadd.f32 %v725_v58, %v556_v57  ;;  %920 = vst.msk [vmem:[#allocation2 + $0x100] sm:$0xff] %vm887_vm0, %v804_v25  ;;  %v2119_v57 = vld [vmem:[#allocation3 + $0x1a8] sm:$0xf0]  ;;  %v2254_v25 = vld [vmem:[#allocation3 + $0xd4] sm:$0xf0] }
  0xad   :  { %v2122_v58 = vor.u32 %v2279_v56, %v2119_v57 }
  0xae   :  { %889 = vst.msk [vmem:[#allocation2 + $0x8] sm:$0xff] %vm887_vm0, %v726_v59 }
  0xb0   :  { %v636_v26 = vpop.f32.mrf.mxu2 }
  0xb1   :  { %v805_v27 = vpop.f32.mrf.mxu3 }
  0xb2   :  { %v559_v2 = vpop.f32.mrf.mxu0  ;;  %v806_v28 = vadd.f32 %v805_v27, %v636_v26  ;;  %v2253_v26 = vld [vmem:[#allocation3 + $0xd4] sm:$0xf]  ;;  %v2015_v27 = vld [vmem:[#allocation3 + $0xd8] sm:$0xf0] }
  0xb3   :  { %v728_v3 = vpop.f32.mrf.mxu1  ;;  %v2018_v29 = vor.u32 %v2253_v26, %v2015_v27 }
  0xb4   :  { %v729_v4 = vadd.f32 %v728_v3, %v559_v2  ;;  %921 = vst.msk [vmem:[#allocation2 + $0x108] sm:$0xff] %vm887_vm0, %v806_v28  ;;  %v2251_v2 = vld [vmem:[#allocation3 + $0xc4] sm:$0xf]  ;;  %v2007_v3 = vld [vmem:[#allocation3 + $0xc8] sm:$0xf0] }
  0xb5   :  { %598 = vmatmul.bf16.gmra.mxu0 %v1982_v0  ;;  %678 = vmatmul.bf16.gmra.mxu2 %v2110_v31  ;;  %v2005_v0 = vld [vmem:[#allocation3 + $0xc0] sm:$0xf]  ;;  %v2010_v5 = vor.u32 %v2251_v2, %v2007_v3 }
  0xb6   :  { %890 = vst.msk [vmem:[#allocation2 + $0x10] sm:$0xff] %vm887_vm0, %v729_v4  ;;  %767 = vmatmul.bf16.gmra.mxu1 %v1986_v1  ;;  %847 = vmatmul.bf16.gmra.mxu3 %v2114_v34  ;;  %v2252_v1 = vld [vmem:[#allocation3 + $0xc4] sm:$0xf0] }
  0xb7   :  { %v2006_v4 = vor.u32 %v2252_v1, %v2005_v0  ;;  %v2285_v0 = vld [vmem:[#allocation3 + $0x1d4] sm:$0xf]  ;;  %v2143_v1 = vld [vmem:[#allocation3 + $0x1d8] sm:$0xf0] }
  0xb8   :  { %v639_v38 = vpop.f32.mrf.mxu2  ;;  %v2146_v2 = vor.u32 %v2285_v0, %v2143_v1 }
  0xb9   :  { %v808_v39 = vpop.f32.mrf.mxu3 }
  0xba   :  { %v561_v11 = vpop.f32.mrf.mxu0  ;;  %v809_v49 = vadd.f32 %v808_v39, %v639_v38  ;;  %v2284_v38 = vld [vmem:[#allocation3 + $0x1c4] sm:$0xf0] }
  0xbb   :  { %v730_v12 = vpop.f32.mrf.mxu1 }
  0xbc   :  { %v731_v13 = vadd.f32 %v730_v12, %v561_v11  ;;  %922 = vst.msk [vmem:[#allocation2 + $0x110] sm:$0xff] %vm887_vm0, %v809_v49  ;;  %v2256_v49 = vld [vmem:[#allocation3 + $0xe4] sm:$0xf0] }
  0xbe   :  { %891 = vst.msk [vmem:[#allocation2 + $0x18] sm:$0xff] %vm887_vm0, %v731_v13  ;;  %v2125_v13 = vld [vmem:[#allocation3 + $0x1b0] sm:$0xf] }
  0xbf   :  { %v2126_v15 = vor.u32 %v2282_v14, %v2125_v13 }
  0xc0   :  { %v641_v50 = vpop.f32.mrf.mxu2 }
  0xc1   :  { %v810_v51 = vpop.f32.mrf.mxu3 }
  0xc2   :  { %v564_v22 = vpop.f32.mrf.mxu0  ;;  %v811_v52 = vadd.f32 %v810_v51, %v641_v50  ;;  %v2255_v50 = vld [vmem:[#allocation3 + $0xe4] sm:$0xf]  ;;  %v2023_v51 = vld [vmem:[#allocation3 + $0xe8] sm:$0xf0] }
  0xc3   :  { %v733_v23 = vpop.f32.mrf.mxu1  ;;  %v2026_v53 = vor.u32 %v2255_v50, %v2023_v51 }
  0xc4   :  { %v734_v24 = vadd.f32 %v733_v23, %v564_v22  ;;  %923 = vst.msk [vmem:[#allocation2 + $0x118] sm:$0xff] %vm887_vm0, %v811_v52 }
  0xc5   :  { %603 = vmatmul.bf16.gmra.mxu0 %v1990_v20  ;;  %683 = vmatmul.bf16.gmra.mxu2 %v2118_v55 }
  0xc6   :  { %892 = vst.msk [vmem:[#allocation2 + $0x20] sm:$0xff] %vm887_vm0, %v734_v24  ;;  %772 = vmatmul.bf16.gmra.mxu1 %v1994_v21  ;;  %852 = vmatmul.bf16.gmra.mxu3 %v2122_v58  ;;  %v2013_v24 = vld [vmem:[#allocation3 + $0xd0] sm:$0xf] }
  0xc7   :  { %v2014_v28 = vor.u32 %v2254_v25, %v2013_v24  ;;  %v2287_v24 = vld [vmem:[#allocation3 + $0x1e4] sm:$0xf]  ;;  %v2151_v25 = vld [vmem:[#allocation3 + $0x1e8] sm:$0xf0] }
  0xc8   :  { %v644_v62 = vpop.f32.mrf.mxu2  ;;  %v2154_v26 = vor.u32 %v2287_v24, %v2151_v25  ;;  %v2483_v25 = vld [vmem:[#allocation2] sm:$0xff] }
  0xc9   :  { %v813_v63 = vpop.f32.mrf.mxu3 }
  0xca   :  { %v566_v35 = vpop.f32.mrf.mxu0  ;;  %v814_v9 = vadd.f32 %v813_v63, %v644_v62  ;;  %v2286_v62 = vld [vmem:[#allocation3 + $0x1d4] sm:$0xf0] }
  0xcb   :  { %v735_v36 = vpop.f32.mrf.mxu1 }
  0xcc   :  { %v736_v37 = vadd.f32 %v735_v36, %v566_v35  ;;  %924 = vst.msk [vmem:[#allocation2 + $0x120] sm:$0xff] %vm887_vm0, %v814_v9  ;;  %v2258_v9 = vld [vmem:[#allocation3 + $0xf4] sm:$0xf0] }
  0xce   :  { %893 = vst.msk [vmem:[#allocation2 + $0x28] sm:$0xff] %vm887_vm0, %v736_v37  ;;  %v2133_v37 = vld [vmem:[#allocation3 + $0x1c0] sm:$0xf] }
  0xcf   :  { %v2134_v39 = vor.u32 %v2284_v38, %v2133_v37 }
  0xd0   :  { %v646_v10 = vpop.f32.mrf.mxu2 }
  0xd1   :  { %v815_v11 = vpop.f32.mrf.mxu3 }
  0xd2   :  { %v569_v46 = vpop.f32.mrf.mxu0  ;;  %v816_v12 = vadd.f32 %v815_v11, %v646_v10  ;;  %v2257_v10 = vld [vmem:[#allocation3 + $0xf4] sm:$0xf]  ;;  %v2031_v11 = vld [vmem:[#allocation3 + $0xf8] sm:$0xf0] }
  0xd3   :  { %v738_v47 = vpop.f32.mrf.mxu1  ;;  %v2034_v13 = vor.u32 %v2257_v10, %v2031_v11 }
  0xd4   :  { %v739_v48 = vadd.f32 %v738_v47, %v569_v46  ;;  %925 = vst.msk [vmem:[#allocation2 + $0x128] sm:$0xff] %vm887_vm0, %v816_v12 }
  0xd5   :  { %608 = vmatmul.bf16.gmra.mxu0 %v1998_v44  ;;  %688 = vmatmul.bf16.gmra.mxu2 %v2126_v15 }
  0xd6   :  { %894 = vst.msk [vmem:[#allocation2 + $0x30] sm:$0xff] %vm887_vm0, %v739_v48  ;;  %777 = vmatmul.bf16.gmra.mxu1 %v2002_v45  ;;  %857 = vmatmul.bf16.gmra.mxu3 %v2130_v18  ;;  %v2021_v48 = vld [vmem:[#allocation3 + $0xe0] sm:$0xf] }
  0xd7   :  { %v2022_v52 = vor.u32 %v2256_v49, %v2021_v48 }
  0xd8   :  { %v649_v22 = vpop.f32.mrf.mxu2 }
  0xd9   :  { %v818_v23 = vpop.f32.mrf.mxu3 }
  0xda   :  { %v571_v59 = vpop.f32.mrf.mxu0  ;;  %v819_v33 = vadd.f32 %v818_v23, %v649_v22  ;;  %v2288_v22 = vld [vmem:[#allocation3 + $0x1e4] sm:$0xf0] }
  0xdb   :  { %v740_v60 = vpop.f32.mrf.mxu1 }
  0xdc   :  { %v741_v61 = vadd.f32 %v740_v60, %v571_v59  ;;  %926 = vst.msk [vmem:[#allocation2 + $0x130] sm:$0xff] %vm887_vm0, %v819_v33 }
  0xde   :  { %895 = vst.msk [vmem:[#allocation2 + $0x38] sm:$0xff] %vm887_vm0, %v741_v61  ;;  %v2141_v61 = vld [vmem:[#allocation3 + $0x1d0] sm:$0xf] }
  0xdf   :  { %v2142_v63 = vor.u32 %v2286_v62, %v2141_v61 }
  0xe0   :  { %v651_v34 = vpop.f32.mrf.mxu2 }
  0xe1   :  { %v820_v35 = vpop.f32.mrf.mxu3 }
  0xe2   :  { %v574_v6 = vpop.f32.mrf.mxu0  ;;  %v821_v36 = vadd.f32 %v820_v35, %v651_v34 }
  0xe3   :  { %v743_v7 = vpop.f32.mrf.mxu1 }
  0xe4   :  { %v744_v8 = vadd.f32 %v743_v7, %v574_v6  ;;  %927 = vst.msk [vmem:[#allocation2 + $0x138] sm:$0xff] %vm887_vm0, %v821_v36 }
  0xe5   :  { %613 = vmatmul.bf16.gmra.mxu0 %v2006_v4  ;;  %693 = vmatmul.bf16.gmra.mxu2 %v2134_v39  ;;  %v2157_v39 = vld [vmem:[#allocation3 + $0x1f0] sm:$0xf] }
  0xe6   :  { %896 = vst.msk [vmem:[#allocation2 + $0x40] sm:$0xff] %vm887_vm0, %v744_v8  ;;  %782 = vmatmul.bf16.gmra.mxu1 %v2010_v5  ;;  %862 = vmatmul.bf16.gmra.mxu3 %v2138_v42  ;;  %v2029_v8 = vld [vmem:[#allocation3 + $0xf0] sm:$0xf]  ;;  %v2158_v41 = vor.u32 %v2290_v40, %v2157_v39  ;;  %v2289_v42 = vld [vmem:[#allocation3 + $0x1f4] sm:$0xf] }
  0xe7   :  { %v2030_v12 = vor.u32 %v2258_v9, %v2029_v8 }
  0xe8   :  { %v654_v46 = vpop.f32.mrf.mxu2 }
  0xe9   :  { %v823_v47 = vpop.f32.mrf.mxu3 }
  0xea   :  { %v576_v19 = vpop.f32.mrf.mxu0  ;;  %v824_v57 = vadd.f32 %v823_v47, %v654_v46 }
  0xeb   :  { %v745_v20 = vpop.f32.mrf.mxu1 }
  0xec   :  { %v746_v21 = vadd.f32 %v745_v20, %v576_v19  ;;  %928 = vst.msk [vmem:[#allocation2 + $0x140] sm:$0xff] %vm887_vm0, %v824_v57 }
  0xee   :  { %897 = vst.msk [vmem:[#allocation2 + $0x48] sm:$0xff] %vm887_vm0, %v746_v21  ;;  %v2149_v21 = vld [vmem:[#allocation3 + $0x1e0] sm:$0xf] }
  0xef   :  { %v2150_v23 = vor.u32 %v2288_v22, %v2149_v21  ;;  %v2481_v22 = vld [vmem:[#allocation2 + $0x8] sm:$0xff] }
  0xf0   :  { %v656_v58 = vpop.f32.mrf.mxu2 }
  0xf1   :  { %v825_v59 = vpop.f32.mrf.mxu3 }
  0xf2   :  { %v579_v30 = vpop.f32.mrf.mxu0  ;;  %v826_v60 = vadd.f32 %v825_v59, %v656_v58 }
  0xf3   :  { %v748_v31 = vpop.f32.mrf.mxu1 }
  0xf4   :  { %v749_v32 = vadd.f32 %v748_v31, %v579_v30  ;;  %929 = vst.msk [vmem:[#allocation2 + $0x148] sm:$0xff] %vm887_vm0, %v826_v60 }
  0xf5   :  { %618 = vmatmul.bf16.gmra.mxu0 %v2014_v28  ;;  %698 = vmatmul.bf16.gmra.mxu2 %v2142_v63 }
  0xf6   :  { %898 = vst.msk [vmem:[#allocation2 + $0x50] sm:$0xff] %vm887_vm0, %v749_v32  ;;  %787 = vmatmul.bf16.gmra.mxu1 %v2018_v29  ;;  %867 = vmatmul.bf16.gmra.mxu3 %v2146_v2 }
  0xf8   :  { %v659_v6 = vpop.f32.mrf.mxu2 }
  0xf9   :  { %v828_v7 = vpop.f32.mrf.mxu3 }
  0xfa   :  { %v581_v43 = vpop.f32.mrf.mxu0  ;;  %v829_v17 = vadd.f32 %v828_v7, %v659_v6 }
  0xfb   :  { %v750_v44 = vpop.f32.mrf.mxu1 }
  0xfc   :  { %v751_v45 = vadd.f32 %v750_v44, %v581_v43  ;;  %930 = vst.msk [vmem:[#allocation2 + $0x150] sm:$0xff] %vm887_vm0, %v829_v17  ;;  %v2159_v43 = vld [vmem:[#allocation3 + $0x1f8] sm:$0xf0] }
  0xfd   :  { %v2162_v44 = vor.u32 %v2289_v42, %v2159_v43 }
  0xfe   :  { %899 = vst.msk [vmem:[#allocation2 + $0x58] sm:$0xff] %vm887_vm0, %v751_v45 }
 0x100   :  { %v661_v18 = vpop.f32.mrf.mxu2 }
 0x101   :  { %v830_v19 = vpop.f32.mrf.mxu3 }
 0x102   :  { %v584_v54 = vpop.f32.mrf.mxu0  ;;  %v831_v20 = vadd.f32 %v830_v19, %v661_v18 }
 0x103   :  { %v753_v55 = vpop.f32.mrf.mxu1 }
 0x104   :  { %v754_v56 = vadd.f32 %v753_v55, %v584_v54  ;;  %931 = vst.msk [vmem:[#allocation2 + $0x158] sm:$0xff] %vm887_vm0, %v831_v20 }
 0x105   :  { %623 = vmatmul.bf16.gmra.mxu0 %v2022_v52  ;;  %703 = vmatmul.bf16.gmra.mxu2 %v2150_v23 }
 0x106   :  { %900 = vst.msk [vmem:[#allocation2 + $0x60] sm:$0xff] %vm887_vm0, %v754_v56  ;;  %792 = vmatmul.bf16.gmra.mxu1 %v2026_v53  ;;  %872 = vmatmul.bf16.gmra.mxu3 %v2154_v26 }
 0x108   :  { %v664_v30 = vpop.f32.mrf.mxu2 }
 0x109   :  { %v833_v31 = vpop.f32.mrf.mxu3 }
 0x10a   :  { %v586_v3 = vpop.f32.mrf.mxu0  ;;  %v834_v35 = vadd.f32 %v833_v31, %v664_v30  ;;  %v2485_v30 = vld [vmem:[#allocation2 + $0x10] sm:$0xff] }
 0x10b   :  { %v755_v4 = vpop.f32.mrf.mxu1  ;;  %v1222_v40 = vsel %vm887_vm0, %v2485_v30, 0.0 }
 0x10c   :  { %v756_v5 = vadd.f32 %v755_v4, %v586_v3  ;;  %932 = vst.msk [vmem:[#allocation2 + $0x160] sm:$0xff] %vm887_vm0, %v834_v35  ;;  %v1220_v35 = vsel %vm887_vm0, %v2481_v22, 0.0 }
 0x10e   :  { %901 = vst.msk [vmem:[#allocation2 + $0x68] sm:$0xff] %vm887_vm0, %v756_v5 }
 0x110   :  { %v666_v36 = vpop.f32.mrf.mxu2 }
 0x111   :  { %v835_v37 = vpop.f32.mrf.mxu3 }
 0x112   :  { %v589_v14 = vpop.f32.mrf.mxu0  ;;  %v836_v38 = vadd.f32 %v835_v37, %v666_v36  ;;  %v1362_v36 = vmul.f32 %v2485_v30, %v2485_v30  ;;  %v2500_v37 = vld [vmem:[#allocation2 + $0x20] sm:$0xff] }
 0x113   :  { %v758_v15 = vpop.f32.mrf.mxu1 }
 0x114   :  { %v759_v16 = vadd.f32 %v758_v15, %v589_v14  ;;  %933 = vst.msk [vmem:[#allocation2 + $0x168] sm:$0xff] %vm887_vm0, %v836_v38  ;;  %v1219_v38 = vsel %vm887_vm0, %v2483_v25, 0.0 }
 0x115   :  { %628 = vmatmul.bf16.gmra.mxu0 %v2030_v12  ;;  %708 = vmatmul.bf16.gmra.mxu2 %v2158_v41  ;;  %v1221_v43 = vadd.f32 %v1220_v35, %v1219_v38 }
 0x116   :  { %902 = vst.msk [vmem:[#allocation2 + $0x70] sm:$0xff] %vm887_vm0, %v759_v16  ;;  %797 = vmatmul.bf16.gmra.mxu1 %v2034_v13  ;;  %877 = vmatmul.bf16.gmra.mxu3 %v2162_v44  ;;  %v2510_v44 = vld [vmem:[#allocation2 + $0x28] sm:$0xff] }
 0x118   :  { %v669_v48 = vpop.f32.mrf.mxu2 }
 0x119   :  { %v838_v49 = vpop.f32.mrf.mxu3 }
 0x11a   :  { %v591_v27 = vpop.f32.mrf.mxu0  ;;  %v839_v53 = vadd.f32 %v838_v49, %v669_v48  ;;  %v1364_v49 = vmul.f32 %v2500_v37, %v2500_v37 }
 0x11b   :  { %v760_v28 = vpop.f32.mrf.mxu1 }
 0x11c   :  { %v761_v29 = vadd.f32 %v760_v28, %v591_v27  ;;  %934 = vst.msk [vmem:[#allocation2 + $0x170] sm:$0xff] %vm887_vm0, %v839_v53 }
 0x11e   :  { %903 = vst.msk [vmem:[#allocation2 + $0x78] sm:$0xff] %vm887_vm0, %v761_v29 }
 0x120   :  { %v671_v54 = vpop.f32.mrf.mxu2 }
 0x121   :  { %v840_v55 = vpop.f32.mrf.mxu3 }
 0x122   :  { %v594_v32 = vpop.f32.mrf.mxu0  ;;  %v841_v56 = vadd.f32 %v840_v55, %v671_v54  ;;  %v1223_v55 = vadd.f32 %v1222_v40, %v1221_v43 }
 0x123   :  { %v763_v33 = vpop.f32.mrf.mxu1 }
 0x124   :  { %v764_v34 = vadd.f32 %v763_v33, %v594_v32  ;;  %935 = vst.msk [vmem:[#allocation2 + $0x178] sm:$0xff] %vm887_vm0, %v841_v56  ;;  %v1361_v32 = vmul.f32 %v2481_v22, %v2481_v22  ;;  %v1360_v33 = vmul.f32 %v2483_v25, %v2483_v25 }
 0x126   :  { %904 = vst.msk [vmem:[#allocation2 + $0x80] sm:$0xff] %vm887_vm0, %v764_v34  ;;  %v2492_v34 = vld [vmem:[#allocation2 + $0x18] sm:$0xff]  ;;  %v1425_v39 = vsel %vm887_vm0, %v1361_v32, 0.0  ;;  %v1424_v42 = vsel %vm887_vm0, %v1360_v33, 0.0 }
 0x127   :  { %v1363_v41 = vmul.f32 %v2492_v34, %v2492_v34  ;;  %v1224_v48 = vsel %vm887_vm0, %v2492_v34, 0.0  ;;  %v1426_v54 = vadd.f32 %v1425_v39, %v1424_v42  ;;  %v2563_v39 = vld [vmem:[#allocation2 + $0x60] sm:$0xff] }
 0x128   :  { %v674_v60 = vpop.f32.mrf.mxu2 }
 0x129   :  { %v843_v61 = vpop.f32.mrf.mxu3  ;;  %v1429_v56 = vsel %vm887_vm0, %v1363_v41, 0.0 }
 0x12a   :  { %v596_v45 = vpop.f32.mrf.mxu0  ;;  %v844_v1 = vadd.f32 %v843_v61, %v674_v60  ;;  %v1225_v60 = vadd.f32 %v1224_v48, %v1223_v55 }
 0x12b   :  { %v765_v46 = vpop.f32.mrf.mxu1 }
 0x12c   :  { %v766_v47 = vadd.f32 %v765_v46, %v596_v45  ;;  %936 = vst.msk [vmem:[#allocation2 + $0x180] sm:$0xff] %vm887_vm0, %v844_v1 }
 0x12e   :  { %905 = vst.msk [vmem:[#allocation2 + $0x88] sm:$0xff] %vm887_vm0, %v766_v47  ;;  %v1427_v47 = vsel %vm887_vm0, %v1362_v36, 0.0 }
 0x130   :  { %v676_v2 = vpop.f32.mrf.mxu2 }
 0x131   :  { %v845_v3 = vpop.f32.mrf.mxu3 }
 0x132   :  { %v599_v50 = vpop.f32.mrf.mxu0  ;;  %v846_v4 = vadd.f32 %v845_v3, %v676_v2  ;;  %v2532_v3 = vld [vmem:[#allocation2 + $0x40] sm:$0xff] }
 0x133   :  { %v768_v51 = vpop.f32.mrf.mxu1 }
 0x134   :  { %v769_v52 = vadd.f32 %v768_v51, %v599_v50  ;;  %937 = vst.msk [vmem:[#allocation2 + $0x188] sm:$0xff] %vm887_vm0, %v846_v4  ;;  %v2517_v50 = vld [vmem:[#allocation2 + $0x30] sm:$0xff] }
 0x135   :  { %v1366_v61 = vmul.f32 %v2517_v50, %v2517_v50 }
 0x136   :  { %906 = vst.msk [vmem:[#allocation2 + $0x90] sm:$0xff] %vm887_vm0, %v769_v52 }
 0x138   :  { %v679_v8 = vpop.f32.mrf.mxu2 }
 0x139   :  { %v848_v9 = vpop.f32.mrf.mxu3 }
 0x13a   :  { %v601_v57 = vpop.f32.mrf.mxu0  ;;  %v849_v13 = vadd.f32 %v848_v9, %v679_v8  ;;  %v1435_v9 = vsel %vm887_vm0, %v1366_v61, 0.0 }
 0x13b   :  { %v770_v58 = vpop.f32.mrf.mxu1 }
 0x13c   :  { %v771_v59 = vadd.f32 %v770_v58, %v601_v57  ;;  %938 = vst.msk [vmem:[#allocation2 + $0x190] sm:$0xff] %vm887_vm0, %v849_v13  ;;  %v1226_v57 = vsel %vm887_vm0, %v2500_v37, 0.0  ;;  %v1365_v58 = vmul.f32 %v2510_v44, %v2510_v44 }
 0x13d   :  { %v1227_v2 = vadd.f32 %v1226_v57, %v1225_v60  ;;  %v1242_v60 = vsel %vm887_vm0, %v2563_v39, 0.0 }
 0x13e   :  { %907 = vst.msk [vmem:[#allocation2 + $0x98] sm:$0xff] %vm887_vm0, %v771_v59  ;;  %v1428_v59 = vadd.f32 %v1427_v47, %v1426_v54  ;;  %v1433_v4 = vsel %vm887_vm0, %v1365_v58, 0.0 }
 0x140   :  { %v681_v14 = vpop.f32.mrf.mxu2  ;;  %v1430_v1 = vadd.f32 %v1429_v56, %v1428_v59 }
 0x141   :  { %v850_v15 = vpop.f32.mrf.mxu3 }
 0x142   :  { %v604_v62 = vpop.f32.mrf.mxu0  ;;  %v851_v16 = vadd.f32 %v850_v15, %v681_v14  ;;  %v1368_v14 = vmul.f32 %v2532_v3, %v2532_v3 }
 0x143   :  { %v773_v63 = vpop.f32.mrf.mxu1 }
 0x144   :  { %v774_v0 = vadd.f32 %v773_v63, %v604_v62  ;;  %939 = vst.msk [vmem:[#allocation2 + $0x198] sm:$0xff] %vm887_vm0, %v851_v16  ;;  %v2527_v62 = vld [vmem:[#allocation2 + $0x38] sm:$0xff]  ;;  %v1431_v63 = vsel %vm887_vm0, %v1364_v49, 0.0  ;;  %v1439_v32 = vsel %vm887_vm0, %v1368_v14, 0.0 }
 0x145   :  { %v1232_v13 = vsel %vm887_vm0, %v2527_v62, 0.0 }
 0x146   :  { %908 = vst.msk [vmem:[#allocation2 + $0xa0] sm:$0xff] %vm887_vm0, %v774_v0  ;;  %v1228_v0 = vsel %vm887_vm0, %v2510_v44, 0.0 }
 0x147   :  { %v1229_v8 = vadd.f32 %v1228_v0, %v1227_v2  ;;  %v2587_v2 = vld [vmem:[#allocation2 + $0x78] sm:$0xff] }
 0x148   :  { %v684_v20 = vpop.f32.mrf.mxu2 }
 0x149   :  { %v853_v21 = vpop.f32.mrf.mxu3 }
 0x14a   :  { %v606_v5 = vpop.f32.mrf.mxu0  ;;  %v854_v27 = vadd.f32 %v853_v21, %v684_v20  ;;  %v2546_v21 = vld [vmem:[#allocation2 + $0x50] sm:$0xff] }
 0x14b   :  { %v775_v6 = vpop.f32.mrf.mxu1  ;;  %v1370_v35 = vmul.f32 %v2546_v21, %v2546_v21  ;;  %v1238_v41 = vsel %vm887_vm0, %v2546_v21, 0.0 }
 0x14c   :  { %v776_v7 = vadd.f32 %v775_v6, %v606_v5  ;;  %940 = vst.msk [vmem:[#allocation2 + $0x1a0] sm:$0xff] %vm887_vm0, %v854_v27  ;;  %v1230_v5 = vsel %vm887_vm0, %v2517_v50, 0.0  ;;  %v1367_v6 = vmul.f32 %v2527_v62, %v2527_v62 }
 0x14d   :  { %v1231_v20 = vadd.f32 %v1230_v5, %v1229_v8  ;;  %v1443_v49 = vsel %vm887_vm0, %v1370_v35, 0.0  ;;  %v2592_v8 = vld [vmem:[#allocation2 + $0x80] sm:$0xff] }
 0x14e   :  { %909 = vst.msk [vmem:[#allocation2 + $0xa8] sm:$0xff] %vm887_vm0, %v776_v7  ;;  %v1432_v7 = vadd.f32 %v1431_v63, %v1430_v1 }
 0x150   :  { %v686_v28 = vpop.f32.mrf.mxu2 }
 0x151   :  { %v855_v29 = vpop.f32.mrf.mxu3 }
 0x152   :  { %v609_v10 = vpop.f32.mrf.mxu0  ;;  %v856_v31 = vadd.f32 %v855_v29, %v686_v28  ;;  %v1233_v29 = vadd.f32 %v1232_v13, %v1231_v20  ;;  %v1376_v20 = vmul.f32 %v2592_v8, %v2592_v8 }
 0x153   :  { %v778_v11 = vpop.f32.mrf.mxu1 }
 0x154   :  { %v779_v12 = vadd.f32 %v778_v11, %v609_v10  ;;  %941 = vst.msk [vmem:[#allocation2 + $0x1a8] sm:$0xff] %vm887_vm0, %v856_v31  ;;  %v2540_v10 = vld [vmem:[#allocation2 + $0x48] sm:$0xff]  ;;  %v2554_v31 = vld [vmem:[#allocation2 + $0x58] sm:$0xff] }
 0x155   :  { %v1369_v27 = vmul.f32 %v2540_v10, %v2540_v10  ;;  %v1236_v33 = vsel %vm887_vm0, %v2540_v10, 0.0  ;;  %v1371_v42 = vmul.f32 %v2554_v31, %v2554_v31 }
 0x156   :  { %910 = vst.msk [vmem:[#allocation2 + $0xb0] sm:$0xff] %vm887_vm0, %v779_v12 }
 0x157   :  { %v1441_v40 = vsel %vm887_vm0, %v1369_v27, 0.0  ;;  %v1445_v59 = vsel %vm887_vm0, %v1371_v42, 0.0  ;;  %v2614_v42 = vld [vmem:[#allocation2 + $0x98] sm:$0xff] }
 0x158   :  { %v689_v52 = vpop.f32.mrf.mxu2 }
 0x159   :  { %v858_v53 = vpop.f32.mrf.mxu3 }
 0x15a   :  { %v611_v17 = vpop.f32.mrf.mxu0  ;;  %v859_v16 = vadd.f32 %v858_v53, %v689_v52  ;;  %v1372_v52 = vmul.f32 %v2563_v39, %v2563_v39  ;;  %v2577_v53 = vld [vmem:[#allocation2 + $0x70] sm:$0xff] }
 0x15b   :  { %v780_v18 = vpop.f32.mrf.mxu1  ;;  %v1374_v1 = vmul.f32 %v2577_v53, %v2577_v53 }
 0x15c   :  { %v781_v19 = vadd.f32 %v780_v18, %v611_v17  ;;  %942 = vst.msk [vmem:[#allocation2 + $0x1b0] sm:$0xff] %vm887_vm0, %v859_v16  ;;  %v2600_v16 = vld [vmem:[#allocation2 + $0x88] sm:$0xff] }
 0x15e   :  { %911 = vst.msk [vmem:[#allocation2 + $0xb8] sm:$0xff] %vm887_vm0, %v781_v19  ;;  %v1434_v19 = vadd.f32 %v1433_v4, %v1432_v7  ;;  %v1447_v4 = vsel %vm887_vm0, %v1372_v52, 0.0 }
 0x160   :  { %v691_v17 = vpop.f32.mrf.mxu2  ;;  %v1436_v28 = vadd.f32 %v1435_v9, %v1434_v19  ;;  %v1248_v19 = vsel %vm887_vm0, %v2587_v2, 0.0 }
 0x161   :  { %v860_v18 = vpop.f32.mrf.mxu3 }
 0x162   :  { %v614_v23 = vpop.f32.mrf.mxu0 }
 0x163   :  { %v783_v24 = vpop.f32.mrf.mxu1 }
 0x164   :  { %v784_v26 = vadd.f32 %v783_v24, %v614_v23  ;;  %v861_v23 = vadd.f32 %v860_v18, %v691_v17  ;;  %v1437_v24 = vsel %vm887_vm0, %v1367_v6, 0.0 }
 0x165   :  { %v1438_v36 = vadd.f32 %v1437_v24, %v1436_v28 }
 0x166   :  { %912 = vst.msk [vmem:[#allocation2 + $0xc0] sm:$0xff] %vm887_vm0, %v784_v26  ;;  %v1234_v26 = vsel %vm887_vm0, %v2532_v3, 0.0 }
 0x167   :  { %943 = vst.msk [vmem:[#allocation2 + $0x1b8] sm:$0xff] %vm887_vm0, %v861_v23  ;;  %v1235_v38 = vadd.f32 %v1234_v26, %v1233_v29  ;;  %v1440_v43 = vadd.f32 %v1439_v32, %v1438_v36  ;;  %v2606_v32 = vld [vmem:[#allocation2 + $0x90] sm:$0xff]  ;;  %v1250_v36 = vsel %vm887_vm0, %v2592_v8, 0.0 }
 0x168   :  { %v694_v55 = vpop.f32.mrf.mxu2 }
 0x169   :  { %v863_v56 = vpop.f32.mrf.mxu3  ;;  %v1442_v57 = vadd.f32 %v1441_v40, %v1440_v43  ;;  %v1455_v43 = vsel %vm887_vm0, %v1376_v20, 0.0 }
 0x16a   :  { %v616_v45 = vpop.f32.mrf.mxu0  ;;  %v864_v24 = vadd.f32 %v863_v56, %v694_v55  ;;  %v1379_v55 = vmul.f32 %v2614_v42, %v2614_v42 }
 0x16b   :  { %v785_v46 = vpop.f32.mrf.mxu1  ;;  %v1444_v63 = vadd.f32 %v1443_v49, %v1442_v57 }
 0x16c   :  { %v786_v51 = vadd.f32 %v785_v46, %v616_v45  ;;  %v1237_v45 = vadd.f32 %v1236_v33, %v1235_v38  ;;  %v2570_v46 = vld [vmem:[#allocation2 + $0x68] sm:$0xff]  ;;  %v1377_v38 = vmul.f32 %v2600_v16, %v2600_v16  ;;  %944 = vst.msk [vmem:[#allocation2 + $0x1c0] sm:$0xff] %vm887_vm0, %v864_v24 }
 0x16d   :  { %v1373_v61 = vmul.f32 %v2570_v46, %v2570_v46  ;;  %v1244_v5 = vsel %vm887_vm0, %v2570_v46, 0.0  ;;  %v1446_v6 = vadd.f32 %v1445_v59, %v1444_v63  ;;  %v1256_v63 = vsel %vm887_vm0, %v2614_v42, 0.0 }
 0x16e   :  { %913 = vst.msk [vmem:[#allocation2 + $0xc8] sm:$0xff] %vm887_vm0, %v786_v51  ;;  %v1240_v51 = vsel %vm887_vm0, %v2554_v31, 0.0  ;;  %v1239_v58 = vadd.f32 %v1238_v41, %v1237_v45  ;;  %v1252_v45 = vsel %vm887_vm0, %v2600_v16, 0.0  ;;  %v1457_v52 = vsel %vm887_vm0, %v1377_v38, 0.0 }
 0x16f   :  { %v1449_v9 = vsel %vm887_vm0, %v1373_v61, 0.0  ;;  %v1448_v13 = vadd.f32 %v1447_v4, %v1446_v6 }
 0x170   :  { %v1241_v0 = vadd.f32 %v1240_v51, %v1239_v58  ;;  %v696_v26 = vpop.f32.mrf.mxu2  ;;  %v2623_v51 = vld [vmem:[#allocation2 + $0xa0] sm:$0xff]  ;;  %v2630_v58 = vld [vmem:[#allocation2 + $0xa8] sm:$0xff] }
 0x171   :  { %v865_v27 = vpop.f32.mrf.mxu3  ;;  %v1450_v28 = vadd.f32 %v1449_v9, %v1448_v13  ;;  %v1381_v13 = vmul.f32 %v2630_v58, %v2630_v58  ;;  %v1260_v20 = vsel %vm887_vm0, %v2630_v58, 0.0 }
 0x172   :  { %v619_v11 = vpop.f32.mrf.mxu0  ;;  %v1243_v7 = vadd.f32 %v1242_v60, %v1241_v0  ;;  %v866_v33 = vadd.f32 %v865_v27, %v696_v26  ;;  %v1380_v0 = vmul.f32 %v2623_v51, %v2623_v51  ;;  %v2652_v26 = vld [vmem:[#allocation2 + $0xc0] sm:$0xff] }
 0x173   :  { %v788_v12 = vpop.f32.mrf.mxu1  ;;  %v1465_v27 = vsel %vm887_vm0, %v1381_v13, 0.0 }
 0x174   :  { %v789_v15 = vadd.f32 %v788_v12, %v619_v11  ;;  %v1246_v11 = vsel %vm887_vm0, %v2577_v53, 0.0  ;;  %v1375_v12 = vmul.f32 %v2587_v2, %v2587_v2  ;;  %v1245_v14 = vadd.f32 %v1244_v5, %v1243_v7  ;;  %945 = vst.msk [vmem:[#allocation2 + $0x1c8] sm:$0xff] %vm887_vm0, %v866_v33 }
 0x175   :  { %v2660_v38 = vld [vmem:[#allocation2 + $0xc8] sm:$0xff] }
 0x176   :  { %914 = vst.msk [vmem:[#allocation2 + $0xd0] sm:$0xff] %vm887_vm0, %v789_v15  ;;  %v1451_v15 = vsel %vm887_vm0, %v1374_v1, 0.0  ;;  %v1247_v29 = vadd.f32 %v1246_v11, %v1245_v14  ;;  %v1453_v35 = vsel %vm887_vm0, %v1375_v12, 0.0  ;;  %v2637_v1 = vld [vmem:[#allocation2 + $0xb0] sm:$0xff]  ;;  %v1461_v11 = vsel %vm887_vm0, %v1379_v55, 0.0 }
 0x177   :  { %v1452_v40 = vadd.f32 %v1451_v15, %v1450_v28  ;;  %v1258_v12 = vsel %vm887_vm0, %v2623_v51, 0.0  ;;  %v1262_v28 = vsel %vm887_vm0, %v2637_v1, 0.0 }
 0x178   :  { %v1249_v41 = vadd.f32 %v1248_v19, %v1247_v29  ;;  %v699_v5 = vpop.f32.mrf.mxu2  ;;  %v1463_v19 = vsel %vm887_vm0, %v1380_v0, 0.0 }
 0x179   :  { %v868_v6 = vpop.f32.mrf.mxu3 }
 0x17a   :  { %v621_v47 = vpop.f32.mrf.mxu0  ;;  %v1251_v49 = vadd.f32 %v1250_v36, %v1249_v41 }
 0x17b   :  { %v790_v48 = vpop.f32.mrf.mxu1 }
 0x17c   :  { %v791_v54 = vadd.f32 %v790_v48, %v621_v47  ;;  %v1378_v47 = vmul.f32 %v2606_v32, %v2606_v32  ;;  %v1454_v48 = vadd.f32 %v1453_v35, %v1452_v40  ;;  %v1253_v57 = vadd.f32 %v1252_v45, %v1251_v49 }
 0x17d   :  { %v1384_v45 = vmul.f32 %v2652_v26, %v2652_v26 }
 0x17e   :  { %915 = vst.msk [vmem:[#allocation2 + $0xd8] sm:$0xff] %vm887_vm0, %v791_v54  ;;  %v1254_v54 = vsel %vm887_vm0, %v2606_v32, 0.0  ;;  %v1456_v56 = vadd.f32 %v1455_v43, %v1454_v48  ;;  %v1459_v61 = vsel %vm887_vm0, %v1378_v47, 0.0  ;;  %v869_v48 = vadd.f32 %v868_v6, %v699_v5 }
 0x17f   :  { %v1255_v9 = vadd.f32 %v1254_v54, %v1253_v57  ;;  %v1471_v5 = vsel %vm887_vm0, %v1384_v45, 0.0  ;;  %v1268_v6 = vsel %vm887_vm0, %v2660_v38, 0.0 }
 0x180   :  { %v1458_v7 = vadd.f32 %v1457_v52, %v1456_v56  ;;  %v701_v49 = vpop.f32.mrf.mxu2  ;;  %v2666_v56 = vld [vmem:[#allocation2 + $0xd0] sm:$0xff]  ;;  %946 = vst.msk [vmem:[#allocation2 + $0x1d0] sm:$0xff] %vm887_vm0, %v869_v48 }
 0x181   :  { %v1257_v15 = vadd.f32 %v1256_v63, %v1255_v9  ;;  %v870_v52 = vpop.f32.mrf.mxu3 }
 0x182   :  { %v624_v17 = vpop.f32.mrf.mxu0  ;;  %v1460_v14 = vadd.f32 %v1459_v61, %v1458_v7  ;;  %v871_v57 = vadd.f32 %v870_v52, %v701_v49  ;;  %v1385_v61 = vmul.f32 %v2660_v38, %v2660_v38  ;;  %v1386_v7 = vmul.f32 %v2666_v56, %v2666_v56 }
 0x183   :  { %v793_v18 = vpop.f32.mrf.mxu1  ;;  %v1259_v24 = vadd.f32 %v1258_v12, %v1257_v15 }
 0x184   :  { %v794_v23 = vadd.f32 %v793_v18, %v624_v17  ;;  %v1382_v17 = vmul.f32 %v2637_v1, %v2637_v1  ;;  %v2647_v18 = vld [vmem:[#allocation2 + $0xb8] sm:$0xff]  ;;  %947 = vst.msk [vmem:[#allocation2 + $0x1d8] sm:$0xff] %vm887_vm0, %v871_v57  ;;  %v1473_v13 = vsel %vm887_vm0, %v1385_v61, 0.0 }
 0x185   :  { %v1383_v29 = vmul.f32 %v2647_v18, %v2647_v18  ;;  %v1261_v35 = vadd.f32 %v1260_v20, %v1259_v24  ;;  %v1264_v43 = vsel %vm887_vm0, %v2647_v18, 0.0 }
 0x186   :  { %916 = vst.msk [vmem:[#allocation2 + $0xe0] sm:$0xff] %vm887_vm0, %v794_v23  ;;  %v1462_v23 = vadd.f32 %v1461_v11, %v1460_v14  ;;  %v1467_v36 = vsel %vm887_vm0, %v1382_v17, 0.0  ;;  %v1270_v14 = vsel %vm887_vm0, %v2666_v56, 0.0 }
 0x187   :  { %v1263_v55 = vadd.f32 %v1262_v28, %v1261_v35 }
 0x188   :  { %v1464_v33 = vadd.f32 %v1463_v19, %v1462_v23  ;;  %v704_v35 = vpop.f32.mrf.mxu2 }
 0x189   :  { %v1265_v0 = vadd.f32 %v1264_v43, %v1263_v55 }
 0x18a   :  { %v626_v59 = vpop.f32.mrf.mxu0  ;;  %v1466_v54 = vadd.f32 %v1465_v27, %v1464_v33  ;;  %v1475_v27 = vsel %vm887_vm0, %v1386_v7, 0.0 }
 0x18b   :  { %v795_v60 = vpop.f32.mrf.mxu1 }
 0x18c   :  { %v796_v4 = vadd.f32 %v795_v60, %v626_v59  ;;  %v1469_v59 = vsel %vm887_vm0, %v1383_v29, 0.0  ;;  %v1266_v60 = vsel %vm887_vm0, %v2652_v26, 0.0  ;;  %v1468_v63 = vadd.f32 %v1467_v36, %v1466_v54  ;;  %v873_v36 = vpop.f32.mrf.mxu3 }
 0x18d   :  { %v1267_v11 = vadd.f32 %v1266_v60, %v1265_v0  ;;  %v2683_v12 = vld [vmem:[#allocation2 + $0xe0] sm:$0xff] }
 0x18e   :  { %917 = vst.msk [vmem:[#allocation2 + $0xe8] sm:$0xff] %vm887_vm0, %v796_v4  ;;  %v2674_v4 = vld [vmem:[#allocation2 + $0xd8] sm:$0xff]  ;;  %v1470_v9 = vadd.f32 %v1469_v59, %v1468_v63  ;;  %v1388_v29 = vmul.f32 %v2683_v12, %v2683_v12  ;;  %v2713_v0 = vld [vmem:[#allocation2 + $0x100] sm:$0xff] }
 0x18f   :  { %v1387_v15 = vmul.f32 %v2674_v4, %v2674_v4  ;;  %v1269_v19 = vadd.f32 %v1268_v6, %v1267_v11  ;;  %v1272_v28 = vsel %vm887_vm0, %v2674_v4, 0.0 }
 0x190   :  { %v1472_v17 = vadd.f32 %v1471_v5, %v1470_v9  ;;  %v1479_v54 = vsel %vm887_vm0, %v1388_v29, 0.0  ;;  %v874_v9 = vadd.f32 %v873_v36, %v704_v35  ;;  %v706_v11 = vpop.f32.mrf.mxu2  ;;  %v2727_v29 = vld [vmem:[#allocation2 + $0x110] sm:$0xff]  ;;  %v1282_v36 = vsel %vm887_vm0, %v2713_v0, 0.0 }
 0x191   :  { %v1477_v45 = vsel %vm887_vm0, %v1387_v15, 0.0 }
 0x192   :  { %v629_v40 = vpop.f32.mrf.mxu0  ;;  %948 = vst.msk [vmem:[#allocation2 + $0x1e0] sm:$0xff] %vm887_vm0, %v874_v9 }
 0x193   :  { %v798_v41 = vpop.f32.mrf.mxu1 }
 0x194   :  { %v799_v47 = vadd.f32 %v798_v41, %v629_v40  ;;  %v1474_v40 = vadd.f32 %v1473_v13, %v1472_v17  ;;  %v1271_v41 = vadd.f32 %v1270_v14, %v1269_v19  ;;  %v875_v13 = vpop.f32.mrf.mxu3  ;;  %v2716_v14 = vld [vmem:[#allocation2 + $0x108] sm:$0xff] }
 0x195   :  { %v2690_v20 = vld [vmem:[#allocation2 + $0xe8] sm:$0xff] }
 0x196   :  { %918 = vst.msk [vmem:[#allocation2 + $0xf0] sm:$0xff] %vm887_vm0, %v799_v47  ;;  %v1274_v47 = vsel %vm887_vm0, %v2683_v12, 0.0  ;;  %v1389_v48 = vmul.f32 %v2690_v20, %v2690_v20  ;;  %v1476_v49 = vadd.f32 %v1475_v27, %v1474_v40  ;;  %v1273_v52 = vadd.f32 %v1272_v28, %v1271_v41 }
 0x197   :  { %v1276_v55 = vsel %vm887_vm0, %v2690_v20, 0.0  ;;  %v1393_v40 = vmul.f32 %v2716_v14, %v2716_v14 }
 0x198   :  { %v1478_v59 = vadd.f32 %v1477_v45, %v1476_v49  ;;  %v1275_v60 = vadd.f32 %v1274_v47, %v1273_v52  ;;  %v1481_v61 = vsel %vm887_vm0, %v1389_v48, 0.0  ;;  %v2735_v45 = vld [vmem:[#allocation2 + $0x118] sm:$0xff]  ;;  %v1284_v52 = vsel %vm887_vm0, %v2716_v14, 0.0 }
 0x19a   :  { %v631_v23 = vpop.f32.mrf.mxu0  ;;  %v1480_v5 = vadd.f32 %v1479_v54, %v1478_v59  ;;  %v1277_v6 = vadd.f32 %v1276_v55, %v1275_v60  ;;  %v1394_v54 = vmul.f32 %v2727_v29, %v2727_v29  ;;  %v2742_v55 = vld [vmem:[#allocation2 + $0x120] sm:$0xff]  ;;  %v1489_v60 = vsel %vm887_vm0, %v1393_v40, 0.0 }
 0x19b   :  { %v800_v24 = vpop.f32.mrf.mxu1 }
 0x19c   :  { %v801_v33 = vadd.f32 %v800_v24, %v631_v23  ;;  %v1482_v15 = vadd.f32 %v1481_v61, %v1480_v5  ;;  %v876_v23 = vadd.f32 %v875_v13, %v706_v11  ;;  %v1392_v24 = vmul.f32 %v2713_v0, %v2713_v0  ;;  %v709_v5 = vpop.f32.mrf.mxu2 }
 0x19d   :  { %v2697_v43 = vld [vmem:[#allocation2 + $0xf0] sm:$0xff]  ;;  %v1286_v61 = vsel %vm887_vm0, %v2727_v29, 0.0  ;;  %v1491_v13 = vsel %vm887_vm0, %v1394_v54, 0.0 }
 0x19e   :  { %919 = vst.msk [vmem:[#allocation2 + $0xf8] sm:$0xff] %vm887_vm0, %v801_v33  ;;  %v1390_v57 = vmul.f32 %v2697_v43, %v2697_v43  ;;  %v1278_v63 = vsel %vm887_vm0, %v2697_v43, 0.0  ;;  %v1487_v49 = vsel %vm887_vm0, %v1392_v24, 0.0 }
 0x19f   :  { %v1279_v17 = vadd.f32 %v1278_v63, %v1277_v6  ;;  %949 = vst.msk [vmem:[#allocation2 + $0x1e8] sm:$0xff] %vm887_vm0, %v876_v23  ;;  %v1395_v63 = vmul.f32 %v2735_v45, %v2735_v45  ;;  %v878_v6 = vpop.f32.mrf.mxu3  ;;  %v2756_v23 = vld [vmem:[#allocation2 + $0x130] sm:$0xff] }
 0x1a0   :  { %v1483_v7 = vsel %vm887_vm0, %v1390_v57, 0.0  ;;  %3434 = vst [vmem:[#allocation6_spill] sm:$0xff] %v2756_v23 }
 0x1a1   :  { %v1484_v33 = vadd.f32 %v1483_v7, %v1482_v15  ;;  %v2749_v7 = vld [vmem:[#allocation2 + $0x128] sm:$0xff]  ;;  %v1288_v15 = vsel %vm887_vm0, %v2735_v45, 0.0 }
 0x1a5   :  { %v2718_v19 = vld [vmem:[#allocation2 + $0xf8] sm:$0xff] }
 0x1a6   :  { %v1280_v27 = vsel %vm887_vm0, %v2718_v19, 0.0  ;;  %v1391_v28 = vmul.f32 %v2718_v19, %v2718_v19 }
 0x1a7   :  { %v1281_v35 = vadd.f32 %v1280_v27, %v1279_v17  ;;  %v1396_v17 = vmul.f32 %v2742_v55, %v2742_v55 }
 0x1a8   :  { %v1485_v41 = vsel %vm887_vm0, %v1391_v28, 0.0  ;;  %v1493_v28 = vsel %vm887_vm0, %v1395_v63, 0.0  ;;  %v879_v63 = vadd.f32 %v878_v6, %v709_v5 }
 0x1a9   :  { %v1283_v47 = vadd.f32 %v1282_v36, %v1281_v35  ;;  %v1486_v48 = vadd.f32 %v1485_v41, %v1484_v33  ;;  %v1290_v33 = vsel %vm887_vm0, %v2742_v55, 0.0  ;;  %v1397_v35 = vmul.f32 %v2749_v7, %v2749_v7  ;;  %v2763_v36 = vld [vmem:[#allocation2 + $0x138] sm:$0xff] }
 0x1aa   :  { %3435 = vst [vmem:[#allocation7_spill] sm:$0xff] %v2763_v36 }
 0x1ab   :  { %v1285_v57 = vadd.f32 %v1284_v52, %v1283_v47  ;;  %v1488_v59 = vadd.f32 %v1487_v49, %v1486_v48  ;;  %v1495_v47 = vsel %vm887_vm0, %v1396_v17, 0.0  ;;  %v1292_v48 = vsel %vm887_vm0, %v2749_v7, 0.0  ;;  %v2770_v52 = vld [vmem:[#allocation2 + $0x140] sm:$0xff]  ;;  %950 = vst.msk [vmem:[#allocation2 + $0x1f0] sm:$0xff] %vm887_vm0, %v879_v63 }
 0x1ac   :  { %v1398_v49 = vmul.f32 %v2756_v23, %v2756_v23  ;;  %3436 = vst [vmem:[#allocation8_spill] sm:$0xff] %v2770_v52  ;;  %v2800_v63 = vld [vmem:[#allocation2 + $0x160] sm:$0xff] }
 0x1ad   :  { %v1287_v9 = vadd.f32 %v1286_v61, %v1285_v57  ;;  %v1490_v11 = vadd.f32 %v1489_v60, %v1488_v59  ;;  %v1497_v59 = vsel %vm887_vm0, %v1397_v35, 0.0  ;;  %v1294_v60 = vsel %vm887_vm0, %v2756_v23, 0.0  ;;  %v2785_v35 = vld [vmem:[#allocation2 + $0x150] sm:$0xff]  ;;  %3440 = vst [vmem:[#allocation12_spill] sm:$0xff] %v2800_v63 }
 0x1ae   :  { %v1399_v61 = vmul.f32 %v2763_v36, %v2763_v36  ;;  %3438 = vst [vmem:[#allocation10_spill] sm:$0xff] %v2785_v35 }
 0x1af   :  { %v1289_v24 = vadd.f32 %v1288_v15, %v1287_v9  ;;  %v1492_v27 = vadd.f32 %v1491_v13, %v1490_v11  ;;  %v711_v9 = vpop.f32.mrf.mxu2  ;;  %v880_v11 = vpop.f32.mrf.mxu3  ;;  %v2777_v13 = vld [vmem:[#allocation2 + $0x148] sm:$0xff] }
 0x1b0   :  { %3437 = vst [vmem:[#allocation9_spill] sm:$0xff] %v2777_v13 }
 0x1b1   :  { %v1291_v40 = vadd.f32 %v1290_v33, %v1289_v24  ;;  %v1494_v41 = vadd.f32 %v1493_v28, %v1492_v27  ;;  %v881_v24 = vadd.f32 %v880_v11, %v711_v9  ;;  %v1499_v27 = vsel %vm887_vm0, %v1398_v49, 0.0 }
 0x1b2   :  { %v1296_v28 = vsel %vm887_vm0, %v2763_v36, 0.0  ;;  %v1400_v33 = vmul.f32 %v2770_v52, %v2770_v52 }
 0x1b3   :  { %v1293_v54 = vadd.f32 %v1292_v48, %v1291_v40  ;;  %v1496_v57 = vadd.f32 %v1495_v47, %v1494_v41  ;;  %951 = vst.msk [vmem:[#allocation2 + $0x1f8] sm:$0xff] %vm887_vm0, %v881_v24  ;;  %v1501_v40 = vsel %vm887_vm0, %v1399_v61, 0.0  ;;  %v1298_v41 = vsel %vm887_vm0, %v2770_v52, 0.0  ;;  %v2793_v48 = vld [vmem:[#allocation2 + $0x158] sm:$0xff]  ;;  %v2807_v24 = vld [vmem:[#allocation2 + $0x168] sm:$0xff] }
 0x1b4   :  { %v1401_v47 = vmul.f32 %v2777_v13, %v2777_v13  ;;  %3439 = vst [vmem:[#allocation11_spill] sm:$0xff] %v2793_v48 }
 0x1b5   :  { %v1295_v15 = vadd.f32 %v1294_v60, %v1293_v54  ;;  %v1498_v17 = vadd.f32 %v1497_v59, %v1496_v57  ;;  %v1503_v57 = vsel %vm887_vm0, %v1400_v33, 0.0  ;;  %v1300_v59 = vsel %vm887_vm0, %v2777_v13, 0.0  ;;  %3441 = vst [vmem:[#allocation13_spill] sm:$0xff] %v2807_v24 }
 0x1b6   :  { %v1402_v60 = vmul.f32 %v2785_v35, %v2785_v35  ;;  %v1505_v11 = vsel %vm887_vm0, %v1401_v47, 0.0 }
 0x1b7   :  { %v1297_v5 = vadd.f32 %v1296_v28, %v1295_v15  ;;  %v1500_v6 = vadd.f32 %v1499_v27, %v1498_v17  ;;  %v1302_v15 = vsel %vm887_vm0, %v2785_v35, 0.0  ;;  %v1403_v17 = vmul.f32 %v2793_v48, %v2793_v48 }
 0x1b8   :  { %v1507_v33 = vsel %vm887_vm0, %v1402_v60, 0.0 }
 0x1b9   :  { %v1299_v49 = vadd.f32 %v1298_v41, %v1297_v5  ;;  %v1502_v54 = vadd.f32 %v1501_v40, %v1500_v6  ;;  %v1304_v5 = vsel %vm887_vm0, %v2793_v48, 0.0  ;;  %v1404_v6 = vmul.f32 %v2800_v63, %v2800_v63  ;;  %v2814_v40 = vld [vmem:[#allocation2 + $0x170] sm:$0xff] }
 0x1ba   :  { %3442 = vst [vmem:[#allocation14_spill] sm:$0xff] %v2814_v40 }
 0x1bb   :  { %v1301_v61 = vadd.f32 %v1300_v59, %v1299_v49  ;;  %v1504_v9 = vadd.f32 %v1503_v57, %v1502_v54  ;;  %v1509_v49 = vsel %vm887_vm0, %v1403_v17, 0.0  ;;  %v1306_v54 = vsel %vm887_vm0, %v2800_v63, 0.0  ;;  %v2821_v59 = vld [vmem:[#allocation2 + $0x178] sm:$0xff] }
 0x1bc   :  { %v1405_v57 = vmul.f32 %v2807_v24, %v2807_v24  ;;  %3443 = vst [vmem:[#allocation15_spill] sm:$0xff] %v2821_v59 }
 0x1bd   :  { %v1303_v27 = vadd.f32 %v1302_v15, %v1301_v61  ;;  %v1506_v28 = vadd.f32 %v1505_v11, %v1504_v9  ;;  %v1511_v9 = vsel %vm887_vm0, %v1404_v6, 0.0  ;;  %v1308_v11 = vsel %vm887_vm0, %v2807_v24, 0.0 }
 0x1be   :  { %v1406_v15 = vmul.f32 %v2814_v40, %v2814_v40  ;;  %v1312_v24 = vsel %vm887_vm0, %v2821_v59, 0.0 }
 0x1bf   :  { %v1305_v41 = vadd.f32 %v1304_v5, %v1303_v27  ;;  %v1508_v47 = vadd.f32 %v1507_v33, %v1506_v28  ;;  %v2828_v27 = vld [vmem:[#allocation2 + $0x180] sm:$0xff]  ;;  %v1513_v33 = vsel %vm887_vm0, %v1405_v57, 0.0  ;;  %v1310_v5 = vsel %vm887_vm0, %v2814_v40, 0.0 }
 0x1c0   :  { %3444 = vst [vmem:[#allocation16_spill] sm:$0xff] %v2828_v27  ;;  %v1314_v40 = vsel %vm887_vm0, %v2828_v27, 0.0 }
 0x1c1   :  { %v1510_v60 = vadd.f32 %v1509_v49, %v1508_v47  ;;  %v1307_v61 = vadd.f32 %v1306_v54, %v1305_v41  ;;  %v1407_v41 = vmul.f32 %v2821_v59, %v2821_v59  ;;  %v2835_v47 = vld [vmem:[#allocation2 + $0x188] sm:$0xff]  ;;  %v1515_v54 = vsel %vm887_vm0, %v1406_v15, 0.0 }
 0x1c2   :  { %3445 = vst [vmem:[#allocation17_spill] sm:$0xff] %v2835_v47  ;;  %v1316_v59 = vsel %vm887_vm0, %v2835_v47, 0.0 }
 0x1c3   :  { %v1309_v17 = vadd.f32 %v1308_v11, %v1307_v61  ;;  %v1512_v28 = vadd.f32 %v1511_v9, %v1510_v60  ;;  %v1408_v60 = vmul.f32 %v2828_v27, %v2828_v27  ;;  %v2842_v61 = vld [vmem:[#allocation2 + $0x190] sm:$0xff]  ;;  %v1517_v11 = vsel %vm887_vm0, %v1407_v41, 0.0 }
 0x1c4   :  { %3446 = vst [vmem:[#allocation18_spill] sm:$0xff] %v2842_v61  ;;  %v1318_v27 = vsel %vm887_vm0, %v2842_v61, 0.0 }
 0x1c5   :  { %v1311_v6 = vadd.f32 %v1310_v5, %v1309_v17  ;;  %v1514_v49 = vadd.f32 %v1513_v33, %v1512_v28  ;;  %v1409_v17 = vmul.f32 %v2835_v47, %v2835_v47  ;;  %v2849_v28 = vld [vmem:[#allocation2 + $0x198] sm:$0xff]  ;;  %v1519_v5 = vsel %vm887_vm0, %v1408_v60, 0.0 }
 0x1c6   :  { %3447 = vst [vmem:[#allocation19_spill] sm:$0xff] %v2849_v28  ;;  %v1320_v47 = vsel %vm887_vm0, %v2849_v28, 0.0 }
 0x1c7   :  { %v1313_v57 = vadd.f32 %v1312_v24, %v1311_v6  ;;  %v1516_v9 = vadd.f32 %v1515_v54, %v1514_v49  ;;  %v1410_v24 = vmul.f32 %v2842_v61, %v2842_v61  ;;  %v2856_v6 = vld [vmem:[#allocation2 + $0x1a0] sm:$0xff]  ;;  %v1521_v54 = vsel %vm887_vm0, %v1409_v17, 0.0 }
 0x1c8   :  { %3448 = vst [vmem:[#allocation20_spill] sm:$0xff] %v2856_v6  ;;  %v1322_v61 = vsel %vm887_vm0, %v2856_v6, 0.0 }
 0x1c9   :  { %v1315_v15 = vadd.f32 %v1314_v40, %v1313_v57  ;;  %v1518_v33 = vadd.f32 %v1517_v11, %v1516_v9  ;;  %v1411_v40 = vmul.f32 %v2849_v28, %v2849_v28  ;;  %v2863_v57 = vld [vmem:[#allocation2 + $0x1a8] sm:$0xff]  ;;  %v1523_v11 = vsel %vm887_vm0, %v1410_v24, 0.0 }
 0x1ca   :  { %3449 = vst [vmem:[#allocation21_spill] sm:$0xff] %v2863_v57  ;;  %v1324_v28 = vsel %vm887_vm0, %v2863_v57, 0.0 }
 0x1cb   :  { %v1317_v41 = vadd.f32 %v1316_v59, %v1315_v15  ;;  %v1520_v49 = vadd.f32 %v1519_v5, %v1518_v33  ;;  %v1412_v59 = vmul.f32 %v2856_v6, %v2856_v6  ;;  %v2870_v15 = vld [vmem:[#allocation2 + $0x1b0] sm:$0xff]  ;;  %v1525_v5 = vsel %vm887_vm0, %v1411_v40, 0.0 }
 0x1cc   :  { %3450 = vst [vmem:[#allocation22_spill] sm:$0xff] %v2870_v15  ;;  %v1326_v6 = vsel %vm887_vm0, %v2870_v15, 0.0 }
 0x1cd   :  { %v1319_v60 = vadd.f32 %v1318_v27, %v1317_v41  ;;  %v1522_v9 = vadd.f32 %v1521_v54, %v1520_v49  ;;  %v1413_v27 = vmul.f32 %v2863_v57, %v2863_v57  ;;  %v2877_v41 = vld [vmem:[#allocation2 + $0x1b8] sm:$0xff]  ;;  %v1527_v54 = vsel %vm887_vm0, %v1412_v59, 0.0 }
 0x1ce   :  { %3451 = vst [vmem:[#allocation23_spill] sm:$0xff] %v2877_v41  ;;  %v1328_v57 = vsel %vm887_vm0, %v2877_v41, 0.0 }
 0x1cf   :  { %v1321_v17 = vadd.f32 %v1320_v47, %v1319_v60  ;;  %v1524_v33 = vadd.f32 %v1523_v11, %v1522_v9  ;;  %v1414_v47 = vmul.f32 %v2870_v15, %v2870_v15  ;;  %v2884_v60 = vld [vmem:[#allocation2 + $0x1c0] sm:$0xff]  ;;  %v1529_v11 = vsel %vm887_vm0, %v1413_v27, 0.0 }
 0x1d0   :  { %3452 = vst [vmem:[#allocation24_spill] sm:$0xff] %v2884_v60 }
 0x1d1   :  { %v1323_v24 = vadd.f32 %v1322_v61, %v1321_v17  ;;  %v1526_v49 = vadd.f32 %v1525_v5, %v1524_v33  ;;  %v1415_v61 = vmul.f32 %v2877_v41, %v2877_v41  ;;  %v2891_v33 = vld [vmem:[#allocation2 + $0x1c8] sm:$0xff]  ;;  %v1531_v5 = vsel %vm887_vm0, %v1414_v47, 0.0 }
 0x1d2   :  { %3453 = vst [vmem:[#allocation25_spill] sm:$0xff] %v2891_v33  ;;  %v2360_v41 = vmov 512.0  }
 0x1d3   :  { %v1325_v40 = vadd.f32 %v1324_v28, %v1323_v24  ;;  %v1528_v9 = vadd.f32 %v1527_v54, %v1526_v49  ;;  %v1416_v28 = vmul.f32 %v2884_v60, %v2884_v60  ;;  %v2898_v49 = vld [vmem:[#allocation2 + $0x1d0] sm:$0xff]  ;;  %v1533_v54 = vsel %vm887_vm0, %v1415_v61, 0.0 }
 0x1d4   :  { %3454 = vst [vmem:[#allocation26_spill] sm:$0xff] %v2898_v49  ;;  %2327 = vrcp.f32 %v2360_v41  ;;  %v1418_v61 = vmul.f32 %v2898_v49, %v2898_v49 }
 0x1d5   :  { %v1327_v17 = vadd.f32 %v1326_v6, %v1325_v40  ;;  %v1530_v59 = vadd.f32 %v1529_v11, %v1528_v9  ;;  %v1330_v6 = vsel %vm887_vm0, %v2884_v60, 0.0  ;;  %v1417_v40 = vmul.f32 %v2891_v33, %v2891_v33  ;;  %v2905_v11 = vld [vmem:[#allocation2 + $0x1d8] sm:$0xff] }
 0x1d6   :  { %3455 = vst [vmem:[#allocation27_spill] sm:$0xff] %v2905_v11  ;;  %v1535_v15 = vsel %vm887_vm0, %v1416_v28, 0.0  ;;  %v1419_v41 = vmul.f32 %v2905_v11, %v2905_v11 }
 0x1d7   :  { %v1329_v24 = vadd.f32 %v1328_v57, %v1327_v17  ;;  %v1532_v27 = vadd.f32 %v1531_v5, %v1530_v59  ;;  %v1332_v57 = vsel %vm887_vm0, %v2891_v33, 0.0  ;;  %v2912_v5 = vld [vmem:[#allocation2 + $0x1e0] sm:$0xff]  ;;  %v1537_v60 = vsel %vm887_vm0, %v1417_v40, 0.0  ;;  %v2926_v33 = vld [vmem:[#allocation2 + $0x1f0] sm:$0xff] }
 0x1d8   :  { %3456 = vst [vmem:[#allocation28_spill] sm:$0xff] %v2912_v5 }
 0x1d9   :  { %v1331_v9 = vadd.f32 %v1330_v6, %v1329_v24  ;;  %v1534_v47 = vadd.f32 %v1533_v54, %v1532_v27  ;;  %v1334_v24 = vsel %vm887_vm0, %v2898_v49, 0.0  ;;  %v2919_v54 = vld [vmem:[#allocation2 + $0x1e8] sm:$0xff]  ;;  %v1539_v6 = vsel %vm887_vm0, %v1418_v61, 0.0  ;;  %3458 = vst [vmem:[#allocation30_spill] sm:$0xff] %v2926_v33 }
 0x1da   :  { %3457 = vst [vmem:[#allocation29_spill] sm:$0xff] %v2919_v54  ;;  %v1541_v49 = vsel %vm887_vm0, %v1419_v41, 0.0  ;;  %v1340_v63 = vsel %vm887_vm0, %v2919_v54, 0.0 }
 0x1db   :  { %v1536_v17 = vadd.f32 %v1535_v15, %v1534_v47  ;;  %v1333_v59 = vadd.f32 %v1332_v57, %v1331_v9  ;;  %v1336_v15 = vsel %vm887_vm0, %v2905_v11, 0.0  ;;  %v1420_v9 = vmul.f32 %v2912_v5, %v2912_v5  ;;  %v2328_v47 = vpop.eup %2327 }
 0x1dc   :  { %vm1357_vm1 = vweird.f32 %v2328_v47 }
 0x1dd   :  { %v1538_v27 = vadd.f32 %v1537_v60, %v1536_v17  ;;  %v1335_v28 = vadd.f32 %v1334_v24, %v1333_v59  ;;  %v1338_v60 = vsel %vm887_vm0, %v2912_v5, 0.0  ;;  %v1421_v17 = vmul.f32 %v2919_v54, %v2919_v54  ;;  %v1215_v24 = vld [vmem:[#allocation2 + $0x1f8] sm:$0xff] }
 0x1de   :  { %v1543_v11 = vsel %vm887_vm0, %v1420_v9, 0.0  ;;  %v1342_v5 = vsel %vm887_vm0, %v2926_v33, 0.0  ;;  %v1423_v48 = vmul.f32 %v1215_v24, %v1215_v24  ;;  %v1344_v9 = vsel %vm887_vm0, %v1215_v24, 0.0 }
 0x1df   :  { %v1540_v40 = vadd.f32 %v1539_v6, %v1538_v27  ;;  %v1337_v57 = vadd.f32 %v1336_v15, %v1335_v28  ;;  %v1422_v27 = vmul.f32 %v2926_v33, %v2926_v33  ;;  %v1353_v28 = vmul.f32 512.0, %v2328_v47 }
 0x1e0   :  { %v1545_v15 = vsel %vm887_vm0, %v1421_v17, 0.0  ;;  %v1549_v13 = vsel %vm887_vm0, %v1423_v48, 0.0 }
 0x1e1   :  { %v1542_v61 = vadd.f32 %v1541_v49, %v1540_v40  ;;  %v1339_v59 = vadd.f32 %v1338_v60, %v1337_v57  ;;  %v1547_v57 = vsel %vm887_vm0, %v1422_v27, 0.0  ;;  %v1354_v60 = vsub.f32 1.0, %v1353_v28 }
 0x1e3   :  { %v1544_v6 = vadd.f32 %v1543_v11, %v1542_v61  ;;  %v1341_v41 = vadd.f32 %v1340_v63, %v1339_v59  ;;  %v1355_v63 = vmul.f32 %v2328_v47, %v1354_v60 }
 0x1e5   :  { %v1546_v49 = vadd.f32 %v1545_v15, %v1544_v6  ;;  %v1343_v40 = vadd.f32 %v1342_v5, %v1341_v41  ;;  %v1356_v33 = vadd.f32 %v2328_v47, %v1355_v63 }
 0x1e7   :  { %v1548_v54 = vadd.f32 %v1547_v57, %v1546_v49  ;;  %v1345_v35 = vadd.f32 %v1344_v9, %v1343_v40  ;;  %v1358_v41 = vsel %vm1357_vm1, %v2328_v47, %v1356_v33 }
 0x1e9   :  { %v1346_v52 = vrot.slane %v1345_v35, 4  ;;  %v1550_v11 = vadd.f32 %v1549_v13, %v1548_v54 }
 0x1eb   :  { %v1347_v61 = vadd.f32 %v1346_v52, %v1345_v35  ;;  %v1551_v17 = vrot.slane %v1550_v11, 4 }
 0x1ed   :  { %v1348_v59 = vrot.slane %v1347_v61, 2  ;;  %v1552_v36 = vadd.f32 %v1551_v17, %v1550_v11  ;;  %v1217_v17 = vld [vmem:[%s3407_s3] sm:$0x1] }
 0x1ef   :  { %v1349_v23 = vadd.f32 %v1348_v59, %v1347_v61  ;;  %v1553_v5 = vrot.slane %v1552_v36, 2 }
 0x1f1   :  { %v1350_v6 = vrot.slane %v1349_v23, 1  ;;  %v1554_v27 = vadd.f32 %v1553_v5, %v1552_v36 }
 0x1f3   :  { %v1351_v15 = vadd.f32 %v1350_v6, %v1349_v23  ;;  %v1555_v28 = vrot.slane %v1554_v27, 1  ;;  %v1216_v23 = vld [vmem:[%s3406_s2] sm:$0x1] }
 0x1f5   :  { %v1359_v49 = vmul.f32 %v1358_v41, %v1351_v15  ;;  %v1556_v40 = vadd.f32 %v1555_v28, %v1554_v27 }
 0x1f7   :  { %v1557_v57 = vmul.f32 %v1556_v40, %v1358_v41  ;;  %v1558_v48 = vmul.f32 %v1359_v49, %v1359_v49 }
 0x1f9   :  { %v1559_v9 = vsub.f32 %v1557_v57, %v1558_v48 }
 0x1fb   :  { %v1560_v13 = vmax.f32 %v1559_v9, 0.0 }
 0x1fd   :  { %v1561_v54 = vadd.f32 1e-05, %v1560_v13 }
 0x1ff   :  { %2329 = vrsqrt.f32 %v1561_v54  ;;  %vm1568_vm3 = vweird.f32 %v1561_v54 }
 0x205   :  { %v2330_v52 = vpop.eup %2329 }
 0x206   :  { %v1563_v35 = vmul.f32 %v2330_v52, %v1561_v54  ;;  %vm1569_vm2 = vweird.f32 %v2330_v52 }
 0x207   :  { %vm1570_vm4 = vmor %vm1568_vm3, %vm1569_vm2 }
 0x208   :  { %v1564_v60 = vmul.f32 %v2330_v52, %v1563_v35 }
 0x20a   :  { %v1565_v11 = vmul.f32 0.5, %v1564_v60 }
 0x20c   :  { %v1566_v63 = vsub.f32 1.5, %v1565_v11 }
 0x20e   :  { %v1567_v61 = vmul.f32 %v2330_v52, %v1566_v63 }
 0x210   :  { %v1571_v36 = vsel %vm1570_vm4, %v2330_v52, %v1567_v61 }
 0x211   :  { %v1572_v33 = vmul.f32 %v1571_v36, %v1216_v23 }
 0x213   :  { %v1573_v47 = vmul.f32 %v1572_v33, %v1359_v49  ;;  %v2950_v5 = vperm.slane %v1572_v33, 0 }
 0x215   :  { %v1574_v59 = vsub.f32 %v1217_v17, %v1573_v47  ;;  %v1641_v27 = vmul.f32 %v2950_v5, %v1215_v24  ;;  %v1578_v15 = vmul.f32 %v2950_v5, %v2483_v25  ;;  %v1579_v28 = vmul.f32 %v2950_v5, %v2481_v22 }
 0x216   :  { %v1580_v49 = vmul.f32 %v2950_v5, %v2485_v30  ;;  %v1581_v57 = vmul.f32 %v2950_v5, %v2492_v34  ;;  %v1582_v24 = vmul.f32 %v2950_v5, %v2500_v37  ;;  %v1583_v25 = vmul.f32 %v2950_v5, %v2510_v44 }
 0x217   :  { %v2952_v6 = vperm.slane %v1574_v59, 0  ;;  %v1584_v30 = vmul.f32 %v2950_v5, %v2517_v50  ;;  %v1585_v34 = vmul.f32 %v2950_v5, %v2527_v62  ;;  %v1586_v37 = vmul.f32 %v2950_v5, %v2532_v3 }
 0x218   :  { %v1587_v11 = vmul.f32 %v2950_v5, %v2540_v10  ;;  %v1588_v50 = vmul.f32 %v2950_v5, %v2546_v21  ;;  %v1589_v62 = vmul.f32 %v2950_v5, %v2554_v31  ;;  %v1590_v3 = vmul.f32 %v2950_v5, %v2563_v39 }
 0x219   :  { %v2956_v41 = vadd.f32 %v2952_v6, %v1641_v27  ;;  %v1645_v40 = vadd.f32 %v2952_v6, %v1578_v15  ;;  %v1646_v48 = vadd.f32 %v2952_v6, %v1579_v28  ;;  %v1647_v9 = vadd.f32 %v2952_v6, %v1580_v49 }
 0x21a   :  { %v1648_v22 = vadd.f32 %v2952_v6, %v1581_v57  ;;  %v1649_v13 = vadd.f32 %v2952_v6, %v1582_v24  ;;  %v1650_v52 = vadd.f32 %v2952_v6, %v1583_v25  ;;  %v1651_v60 = vadd.f32 %v2952_v6, %v1584_v30 }
 0x21b   :  { %v1709_v54 = vmax.f32 %v1645_v40, 0.0  ;;  %v1710_v35 = vmax.f32 %v1646_v48, 0.0  ;;  %v1711_v44 = vmax.f32 %v1647_v9, 0.0  ;;  %v1652_v63 = vadd.f32 %v2952_v6, %v1585_v34 }
 0x21c   :  { %v1712_v61 = vmax.f32 %v1648_v22, 0.0  ;;  %v1653_v23 = vadd.f32 %v2952_v6, %v1586_v37  ;;  %v1713_v36 = vmax.f32 %v1649_v13, 0.0  ;;  %v1654_v47 = vadd.f32 %v2952_v6, %v1587_v11 }
 0x21d   :  { %v1773_v33 = vpack.c.bf16 %v1709_v54, %v1709_v54  ;;  %v1714_v17 = vmax.f32 %v1650_v52, 0.0  ;;  %v1774_v10 = vpack.c.bf16 %v1710_v35, %v1710_v35  ;;  %v1591_v21 = vmul.f32 %v2950_v5, %v2570_v46 }
 0x21e   :  { %v1655_v59 = vadd.f32 %v2952_v6, %v1588_v50  ;;  %v1715_v27 = vmax.f32 %v1651_v60, 0.0  ;;  %v1775_v15 = vpack.c.bf16 %v1711_v44, %v1711_v44  ;;  %v1656_v31 = vadd.f32 %v2952_v6, %v1589_v62 }
 0x21f   :  { %v1716_v28 = vmax.f32 %v1652_v63, 0.0  ;;  %v1776_v49 = vpack.c.bf16 %v1712_v61, %v1712_v61  ;;  %v1592_v40 = vmul.f32 %v2950_v5, %v2577_v53  ;;  %v1657_v39 = vadd.f32 %v2952_v6, %v1590_v3  ;;  %1838 = vst.msk [vmem:[%s3408_s4] sm:$0xf] %vm1837_vm5, %v1773_v33 }
 0x220   :  { %v1717_v57 = vmax.f32 %v1653_v23, 0.0  ;;  %v1777_v48 = vpack.c.bf16 %v1713_v36, %v1713_v36  ;;  %v1593_v46 = vmul.f32 %v2950_v5, %v2587_v2  ;;  %v1658_v24 = vadd.f32 %v2952_v6, %v1591_v21  ;;  %1839 = vst.msk [vmem:[%s3408_s4 + $0x4] sm:$0xf] %vm1837_vm5, %v1774_v10 }
 0x221   :  { %v1718_v9 = vmax.f32 %v1654_v47, 0.0  ;;  %v1778_v25 = vpack.c.bf16 %v1714_v17, %v1714_v17  ;;  %v1594_v53 = vmul.f32 %v2950_v5, %v2592_v8  ;;  %v1659_v22 = vadd.f32 %v2952_v6, %v1592_v40  ;;  %1840 = vst.msk [vmem:[%s3408_s4 + $0x8] sm:$0xf] %vm1837_vm5, %v1775_v15 }
 0x222   :  { %v1719_v30 = vmax.f32 %v1655_v59, 0.0  ;;  %v1779_v13 = vpack.c.bf16 %v1715_v27, %v1715_v27  ;;  %v1595_v2 = vmul.f32 %v2950_v5, %v2600_v16  ;;  %v1660_v54 = vadd.f32 %v2952_v6, %v1593_v46  ;;  %1841 = vst.msk [vmem:[%s3408_s4 + $0xc] sm:$0xf] %vm1837_vm5, %v1776_v49 }
 0x223   :  { %v1720_v34 = vmax.f32 %v1656_v31, 0.0  ;;  %v1780_v52 = vpack.c.bf16 %v1716_v28, %v1716_v28  ;;  %v1596_v8 = vmul.f32 %v2950_v5, %v2606_v32  ;;  %v1661_v35 = vadd.f32 %v2952_v6, %v1594_v53  ;;  %1842 = vst.msk [vmem:[%s3408_s4 + $0x10] sm:$0xf] %vm1837_vm5, %v1777_v48 }
 0x224   :  { %v1721_v37 = vmax.f32 %v1657_v39, 0.0  ;;  %v1781_v60 = vpack.c.bf16 %v1717_v57, %v1717_v57  ;;  %v1597_v16 = vmul.f32 %v2950_v5, %v2614_v42  ;;  %v1662_v44 = vadd.f32 %v2952_v6, %v1595_v2  ;;  %1843 = vst.msk [vmem:[%s3408_s4 + $0x14] sm:$0xf] %vm1837_vm5, %v1778_v25 }
 0x225   :  { %v1722_v11 = vmax.f32 %v1658_v24, 0.0  ;;  %v1782_v50 = vpack.c.bf16 %v1718_v9, %v1718_v9  ;;  %v1598_v32 = vmul.f32 %v2950_v5, %v2623_v51  ;;  %v1663_v63 = vadd.f32 %v2952_v6, %v1596_v8  ;;  %1844 = vst.msk [vmem:[%s3408_s4 + $0x18] sm:$0xf] %vm1837_vm5, %v1779_v13 }
 0x226   :  { %v1723_v61 = vmax.f32 %v1659_v22, 0.0  ;;  %v1783_v62 = vpack.c.bf16 %v1719_v30, %v1719_v30  ;;  %v1599_v42 = vmul.f32 %v2950_v5, %v2630_v58  ;;  %v1664_v23 = vadd.f32 %v2952_v6, %v1597_v16  ;;  %1845 = vst.msk [vmem:[%s3408_s4 + $0x1c] sm:$0xf] %vm1837_vm5, %v1780_v52 }
 0x227   :  { %v1724_v36 = vmax.f32 %v1660_v54, 0.0  ;;  %v1784_v33 = vpack.c.bf16 %v1720_v34, %v1720_v34  ;;  %v1600_v51 = vmul.f32 %v2950_v5, %v2637_v1  ;;  %v1665_v3 = vadd.f32 %v2952_v6, %v1598_v32  ;;  %1846 = vst.msk [vmem:[%s3408_s4 + $0x20] sm:$0xf] %vm1837_vm5, %v1781_v60 }
 0x228   :  { %v1725_v47 = vmax.f32 %v1661_v35, 0.0  ;;  %v1785_v17 = vpack.c.bf16 %v1721_v37, %v1721_v37  ;;  %v1601_v58 = vmul.f32 %v2950_v5, %v2647_v18  ;;  %v1666_v10 = vadd.f32 %v2952_v6, %v1599_v42  ;;  %1847 = vst.msk [vmem:[%s3408_s4 + $0x24] sm:$0xf] %vm1837_vm5, %v1782_v50 }
 0x229   :  { %v1726_v21 = vmax.f32 %v1662_v44, 0.0  ;;  %v1786_v59 = vpack.c.bf16 %v1722_v11, %v1722_v11  ;;  %v1602_v1 = vmul.f32 %v2950_v5, %v2652_v26  ;;  %v1667_v27 = vadd.f32 %v2952_v6, %v1600_v51  ;;  %1848 = vst.msk [vmem:[%s3408_s4 + $0x28] sm:$0xf] %vm1837_vm5, %v1783_v62 }
 0x22a   :  { %v1727_v15 = vmax.f32 %v1663_v63, 0.0  ;;  %v1787_v31 = vpack.c.bf16 %v1723_v61, %v1723_v61  ;;  %v1603_v18 = vmul.f32 %v2950_v5, %v2660_v38  ;;  %v1668_v28 = vadd.f32 %v2952_v6, %v1601_v58  ;;  %1849 = vst.msk [vmem:[%s3408_s4 + $0x2c] sm:$0xf] %vm1837_vm5, %v1784_v33 }
 0x22b   :  { %v1728_v49 = vmax.f32 %v1664_v23, 0.0  ;;  %v1788_v40 = vpack.c.bf16 %v1724_v36, %v1724_v36  ;;  %v1604_v26 = vmul.f32 %v2950_v5, %v2666_v56  ;;  %v1669_v39 = vadd.f32 %v2952_v6, %v1602_v1  ;;  %1850 = vst.msk [vmem:[%s3408_s4 + $0x30] sm:$0xf] %vm1837_vm5, %v1785_v17 }
 0x22c   :  { %v1729_v57 = vmax.f32 %v1665_v3, 0.0  ;;  %v1789_v48 = vpack.c.bf16 %v1725_v47, %v1725_v47  ;;  %v1605_v38 = vmul.f32 %v2950_v5, %v2674_v4  ;;  %v1670_v46 = vadd.f32 %v2952_v6, %v1603_v18  ;;  %1851 = vst.msk [vmem:[%s3408_s4 + $0x34] sm:$0xf] %vm1837_vm5, %v1786_v59 }
 0x22d   :  { %v1730_v24 = vmax.f32 %v1666_v10, 0.0  ;;  %v1790_v9 = vpack.c.bf16 %v1726_v21, %v1726_v21  ;;  %v1606_v56 = vmul.f32 %v2950_v5, %v2683_v12  ;;  %v1671_v25 = vadd.f32 %v2952_v6, %v1604_v26  ;;  %1852 = vst.msk [vmem:[%s3408_s4 + $0x38] sm:$0xf] %vm1837_vm5, %v1787_v31 }
 0x22e   :  { %v1731_v53 = vmax.f32 %v1667_v27, 0.0  ;;  %v1791_v22 = vpack.c.bf16 %v1727_v15, %v1727_v15  ;;  %v1607_v4 = vmul.f32 %v2950_v5, %v2690_v20  ;;  %v1672_v30 = vadd.f32 %v2952_v6, %v1605_v38  ;;  %1853 = vst.msk [vmem:[%s3408_s4 + $0x3c] sm:$0xf] %vm1837_vm5, %v1788_v40 }
 0x22f   :  { %v1732_v13 = vmax.f32 %v1668_v28, 0.0  ;;  %v1792_v2 = vpack.c.bf16 %v1728_v49, %v1728_v49  ;;  %v1608_v12 = vmul.f32 %v2950_v5, %v2697_v43  ;;  %v1673_v54 = vadd.f32 %v2952_v6, %v1606_v56  ;;  %1854 = vst.msk [vmem:[%s3408_s4 + $0x40] sm:$0xf] %vm1837_vm5, %v1789_v48  ;;  %v3461_v28 = vld [vmem:[#allocation8_spill] sm:$0xff] }
 0x230   :  { %v1733_v34 = vmax.f32 %v1669_v39, 0.0  ;;  %v1793_v52 = vpack.c.bf16 %v1729_v57, %v1729_v57  ;;  %v1609_v20 = vmul.f32 %v2950_v5, %v2718_v19  ;;  %v1674_v8 = vadd.f32 %v2952_v6, %v1607_v4  ;;  %1855 = vst.msk [vmem:[%s3408_s4 + $0x44] sm:$0xf] %vm1837_vm5, %v1790_v9  ;;  %v3462_v57 = vld [vmem:[#allocation9_spill] sm:$0xff]  ;;  %v3463_v9 = vld [vmem:[#allocation10_spill] sm:$0xff]  ;;  %v3464_v4 = vld [vmem:[#allocation11_spill] sm:$0xff] }
 0x231   :  { %v1734_v35 = vmax.f32 %v1670_v46, 0.0  ;;  %v1794_v37 = vpack.c.bf16 %v1730_v24, %v1730_v24  ;;  %v1610_v43 = vmul.f32 %v2950_v5, %v2713_v0  ;;  %v1675_v60 = vadd.f32 %v2952_v6, %v1608_v12  ;;  %1856 = vst.msk [vmem:[%s3408_s4 + $0x48] sm:$0xf] %vm1837_vm5, %v1791_v22 }
 0x232   :  { %v1735_v16 = vmax.f32 %v1671_v25, 0.0  ;;  %v1795_v44 = vpack.c.bf16 %v1731_v53, %v1731_v53  ;;  %v1611_v19 = vmul.f32 %v2950_v5, %v2716_v14  ;;  %v1676_v11 = vadd.f32 %v2952_v6, %v1609_v20  ;;  %1857 = vst.msk [vmem:[%s3408_s4 + $0x4c] sm:$0xf] %vm1837_vm5, %v1792_v2 }
 0x233   :  { %v1736_v50 = vmax.f32 %v1672_v30, 0.0  ;;  %v1796_v32 = vpack.c.bf16 %v1732_v13, %v1732_v13  ;;  %v1612_v0 = vmul.f32 %v2950_v5, %v2727_v29  ;;  %v1677_v63 = vadd.f32 %v2952_v6, %v1610_v43  ;;  %1858 = vst.msk [vmem:[%s3408_s4 + $0x50] sm:$0xf] %vm1837_vm5, %v1793_v52 }
 0x234   :  { %v1737_v61 = vmax.f32 %v1673_v54, 0.0  ;;  %v1797_v62 = vpack.c.bf16 %v1733_v34, %v1733_v34  ;;  %v1613_v14 = vmul.f32 %v2950_v5, %v2735_v45  ;;  %v1678_v42 = vadd.f32 %v2952_v6, %v1611_v19  ;;  %1859 = vst.msk [vmem:[%s3408_s4 + $0x54] sm:$0xf] %vm1837_vm5, %v1794_v37  ;;  %v3465_v54 = vld [vmem:[#allocation12_spill] sm:$0xff] }
 0x235   :  { %v1738_v23 = vmax.f32 %v1674_v8, 0.0  ;;  %v1798_v36 = vpack.c.bf16 %v1734_v35, %v1734_v35  ;;  %v1614_v29 = vmul.f32 %v2950_v5, %v2742_v55  ;;  %v1679_v33 = vadd.f32 %v2952_v6, %v1612_v0  ;;  %1860 = vst.msk [vmem:[%s3408_s4 + $0x58] sm:$0xf] %vm1837_vm5, %v1795_v44  ;;  %v3459_v55 = vld [vmem:[#allocation6_spill] sm:$0xff]  ;;  %v3466_v35 = vld [vmem:[#allocation13_spill] sm:$0xff]  ;;  %v3468_v0 = vld [vmem:[#allocation15_spill] sm:$0xff] }
 0x236   :  { %v1739_v51 = vmax.f32 %v1675_v60, 0.0  ;;  %v1799_v3 = vpack.c.bf16 %v1735_v16, %v1735_v16  ;;  %v1615_v45 = vmul.f32 %v2950_v5, %v2749_v7  ;;  %v1680_v47 = vadd.f32 %v2952_v6, %v1613_v14  ;;  %1861 = vst.msk [vmem:[%s3408_s4 + $0x5c] sm:$0xf] %vm1837_vm5, %v1796_v32  ;;  %v3460_v7 = vld [vmem:[#allocation7_spill] sm:$0xff]  ;;  %v3467_v44 = vld [vmem:[#allocation14_spill] sm:$0xff] }
 0x237   :  { %v1740_v17 = vmax.f32 %v1676_v11, 0.0  ;;  %v1800_v58 = vpack.c.bf16 %v1736_v50, %v1736_v50  ;;  %v1616_v10 = vmul.f32 %v2950_v5, %v3459_v55  ;;  %v1681_v21 = vadd.f32 %v2952_v6, %v1614_v29  ;;  %1862 = vst.msk [vmem:[%s3408_s4 + $0x60] sm:$0xf] %vm1837_vm5, %v1797_v62 }
 0x238   :  { %v1741_v59 = vmax.f32 %v1677_v63, 0.0  ;;  %v1801_v1 = vpack.c.bf16 %v1737_v61, %v1737_v61  ;;  %v1617_v27 = vmul.f32 %v2950_v5, %v3460_v7  ;;  %v1682_v15 = vadd.f32 %v2952_v6, %v1615_v45  ;;  %1863 = vst.msk [vmem:[%s3408_s4 + $0x64] sm:$0xf] %vm1837_vm5, %v1798_v36 }
 0x239   :  { %v1742_v31 = vmax.f32 %v1678_v42, 0.0  ;;  %v1802_v18 = vpack.c.bf16 %v1738_v23, %v1738_v23  ;;  %v1618_v49 = vmul.f32 %v2950_v5, %v3461_v28  ;;  %v1683_v40 = vadd.f32 %v2952_v6, %v1616_v10  ;;  %1864 = vst.msk [vmem:[%s3408_s4 + $0x68] sm:$0xf] %vm1837_vm5, %v1799_v3  ;;  %v3469_v42 = vld [vmem:[#allocation16_spill] sm:$0xff] }
 0x23a   :  { %v1743_v26 = vmax.f32 %v1679_v33, 0.0  ;;  %v1803_v39 = vpack.c.bf16 %v1739_v51, %v1739_v51  ;;  %v1619_v48 = vmul.f32 %v2950_v5, %v3462_v57  ;;  %v1684_v38 = vadd.f32 %v2952_v6, %v1617_v27  ;;  %1865 = vst.msk [vmem:[%s3408_s4 + $0x6c] sm:$0xf] %vm1837_vm5, %v1800_v58  ;;  %v3470_v51 = vld [vmem:[#allocation17_spill] sm:$0xff]  ;;  %v3471_v58 = vld [vmem:[#allocation18_spill] sm:$0xff] }
 0x23b   :  { %v1744_v46 = vmax.f32 %v1680_v47, 0.0  ;;  %v1804_v24 = vpack.c.bf16 %v1740_v17, %v1740_v17  ;;  %v1620_v56 = vmul.f32 %v2950_v5, %v3463_v9  ;;  %v1685_v25 = vadd.f32 %v2952_v6, %v1618_v49  ;;  %1866 = vst.msk [vmem:[%s3408_s4 + $0x70] sm:$0xf] %vm1837_vm5, %v1801_v1  ;;  %v3472_v1 = vld [vmem:[#allocation19_spill] sm:$0xff] }
 0x23c   :  { %v1745_v53 = vmax.f32 %v1681_v21, 0.0  ;;  %v1805_v22 = vpack.c.bf16 %v1741_v59, %v1741_v59  ;;  %v1621_v30 = vmul.f32 %v2950_v5, %v3464_v4  ;;  %v1686_v13 = vadd.f32 %v2952_v6, %v1619_v48  ;;  %1867 = vst.msk [vmem:[%s3408_s4 + $0x74] sm:$0xf] %vm1837_vm5, %v1802_v18  ;;  %v3473_v18 = vld [vmem:[#allocation20_spill] sm:$0xff] }
 0x23d   :  { %v1746_v2 = vmax.f32 %v1682_v15, 0.0  ;;  %v1806_v12 = vpack.c.bf16 %v1742_v31, %v1742_v31  ;;  %v1622_v34 = vmul.f32 %v2950_v5, %v3465_v54  ;;  %v1687_v52 = vadd.f32 %v2952_v6, %v1620_v56  ;;  %1868 = vst.msk [vmem:[%s3408_s4 + $0x78] sm:$0xf] %vm1837_vm5, %v1803_v39  ;;  %v3474_v39 = vld [vmem:[#allocation21_spill] sm:$0xff] }
 0x23e   :  { %v1747_v20 = vmax.f32 %v1683_v40, 0.0  ;;  %v1807_v8 = vpack.c.bf16 %v1743_v26, %v1743_v26  ;;  %v1623_v37 = vmul.f32 %v2950_v5, %v3466_v35  ;;  %v1688_v43 = vadd.f32 %v2952_v6, %v1621_v30  ;;  %1869 = vst.msk [vmem:[%s3408_s4 + $0x7c] sm:$0xf] %vm1837_vm5, %v1804_v24  ;;  %v3475_v24 = vld [vmem:[#allocation22_spill] sm:$0xff] }
 0x23f   :  { %v1748_v60 = vmax.f32 %v1684_v38, 0.0  ;;  %v1808_v16 = vpack.c.bf16 %v1744_v46, %v1744_v46  ;;  %v1624_v19 = vmul.f32 %v2950_v5, %v3467_v44  ;;  %v1689_v11 = vadd.f32 %v2952_v6, %v1622_v34  ;;  %1870 = vst.msk [vmem:[%s3408_s4 + $0x80] sm:$0xf] %vm1837_vm5, %v1805_v22  ;;  %v3476_v22 = vld [vmem:[#allocation23_spill] sm:$0xff] }
 0x240   :  { %v1749_v50 = vmax.f32 %v1685_v25, 0.0  ;;  %v1809_v32 = vpack.c.bf16 %v1745_v53, %v1745_v53  ;;  %v1625_v63 = vmul.f32 %v2950_v5, %v3468_v0  ;;  %v1690_v61 = vadd.f32 %v2952_v6, %v1623_v37  ;;  %1871 = vst.msk [vmem:[%s3408_s4 + $0x84] sm:$0xf] %vm1837_vm5, %v1806_v12  ;;  %v3477_v12 = vld [vmem:[#allocation24_spill] sm:$0xff] }
 0x241   :  { %v1750_v62 = vmax.f32 %v1686_v13, 0.0  ;;  %v1810_v14 = vpack.c.bf16 %v1746_v2, %v1746_v2  ;;  %v1626_v23 = vmul.f32 %v2950_v5, %v3469_v42  ;;  %v1691_v36 = vadd.f32 %v2952_v6, %v1624_v19  ;;  %1872 = vst.msk [vmem:[%s3408_s4 + $0x88] sm:$0xf] %vm1837_vm5, %v1807_v8  ;;  %v3478_v8 = vld [vmem:[#allocation25_spill] sm:$0xff] }
 0x242   :  { %v1751_v29 = vmax.f32 %v1687_v52, 0.0  ;;  %v1811_v33 = vpack.c.bf16 %v1747_v20, %v1747_v20  ;;  %v1627_v3 = vmul.f32 %v2950_v5, %v3470_v51  ;;  %v1692_v45 = vadd.f32 %v2952_v6, %v1625_v63  ;;  %1873 = vst.msk [vmem:[%s3408_s4 + $0x8c] sm:$0xf] %vm1837_vm5, %v1808_v16  ;;  %v3479_v16 = vld [vmem:[#allocation26_spill] sm:$0xff] }
 0x243   :  { %v1752_v47 = vmax.f32 %v1688_v43, 0.0  ;;  %v1812_v17 = vpack.c.bf16 %v1748_v60, %v1748_v60  ;;  %v1628_v55 = vmul.f32 %v2950_v5, %v3471_v58  ;;  %v1693_v10 = vadd.f32 %v2952_v6, %v1626_v23  ;;  %1874 = vst.msk [vmem:[%s3408_s4 + $0x90] sm:$0xf] %vm1837_vm5, %v1809_v32  ;;  %v3480_v32 = vld [vmem:[#allocation27_spill] sm:$0xff] }
 0x244   :  { %v1753_v21 = vmax.f32 %v1689_v11, 0.0  ;;  %v1813_v59 = vpack.c.bf16 %v1749_v50, %v1749_v50  ;;  %v1629_v7 = vmul.f32 %v2950_v5, %v3472_v1  ;;  %v1694_v27 = vadd.f32 %v2952_v6, %v1627_v3  ;;  %1875 = vst.msk [vmem:[%s3408_s4 + $0x94] sm:$0xf] %vm1837_vm5, %v1810_v14  ;;  %v3481_v14 = vld [vmem:[#allocation28_spill] sm:$0xff] }
 0x245   :  { %v1754_v15 = vmax.f32 %v1690_v61, 0.0  ;;  %v1814_v31 = vpack.c.bf16 %v1750_v62, %v1750_v62  ;;  %v1630_v28 = vmul.f32 %v2950_v5, %v3473_v18  ;;  %v1695_v49 = vadd.f32 %v2952_v6, %v1628_v55  ;;  %1876 = vst.msk [vmem:[%s3408_s4 + $0x98] sm:$0xf] %vm1837_vm5, %v1811_v33  ;;  %v3482_v33 = vld [vmem:[#allocation29_spill] sm:$0xff] }
 0x246   :  { %v1755_v40 = vmax.f32 %v1691_v36, 0.0  ;;  %v1815_v26 = vpack.c.bf16 %v1751_v29, %v1751_v29  ;;  %v1631_v57 = vmul.f32 %v2950_v5, %v3474_v39  ;;  %v1696_v48 = vadd.f32 %v2952_v6, %v1629_v7  ;;  %1877 = vst.msk [vmem:[%s3408_s4 + $0x9c] sm:$0xf] %vm1837_vm5, %v1812_v17  ;;  %v3483_v17 = vld [vmem:[#allocation30_spill] sm:$0xff] }
 0x247   :  { %v1756_v38 = vmax.f32 %v1692_v45, 0.0  ;;  %v1816_v46 = vpack.c.bf16 %v1752_v47, %v1752_v47  ;;  %v1632_v9 = vmul.f32 %v2950_v5, %v3475_v24  ;;  %v1697_v56 = vadd.f32 %v2952_v6, %v1630_v28  ;;  %1878 = vst.msk [vmem:[%s3408_s4 + $0xa0] sm:$0xf] %vm1837_vm5, %v1813_v59 }
 0x248   :  { %v1757_v25 = vmax.f32 %v1693_v10, 0.0  ;;  %v1817_v53 = vpack.c.bf16 %v1753_v21, %v1753_v21  ;;  %v1633_v4 = vmul.f32 %v2950_v5, %v3476_v22  ;;  %v1698_v30 = vadd.f32 %v2952_v6, %v1631_v57  ;;  %1879 = vst.msk [vmem:[%s3408_s4 + $0xa4] sm:$0xf] %vm1837_vm5, %v1814_v31 }
 0x249   :  { %v1758_v13 = vmax.f32 %v1694_v27, 0.0  ;;  %v1818_v2 = vpack.c.bf16 %v1754_v15, %v1754_v15  ;;  %v1634_v54 = vmul.f32 %v2950_v5, %v3477_v12  ;;  %v1699_v34 = vadd.f32 %v2952_v6, %v1632_v9  ;;  %1880 = vst.msk [vmem:[%s3408_s4 + $0xa8] sm:$0xf] %vm1837_vm5, %v1815_v26 }
 0x24a   :  { %v1759_v52 = vmax.f32 %v1695_v49, 0.0  ;;  %v1819_v20 = vpack.c.bf16 %v1755_v40, %v1755_v40  ;;  %v1635_v35 = vmul.f32 %v2950_v5, %v3478_v8  ;;  %v1700_v37 = vadd.f32 %v2952_v6, %v1633_v4  ;;  %1881 = vst.msk [vmem:[%s3408_s4 + $0xac] sm:$0xf] %vm1837_vm5, %v1816_v46 }
 0x24b   :  { %v1760_v43 = vmax.f32 %v1696_v48, 0.0  ;;  %v1820_v60 = vpack.c.bf16 %v1756_v38, %v1756_v38  ;;  %v1636_v44 = vmul.f32 %v2950_v5, %v3479_v16  ;;  %v1701_v19 = vadd.f32 %v2952_v6, %v1634_v54  ;;  %1882 = vst.msk [vmem:[%s3408_s4 + $0xb0] sm:$0xf] %vm1837_vm5, %v1817_v53 }
 0x24c   :  { %v1761_v11 = vmax.f32 %v1697_v56, 0.0  ;;  %v1821_v50 = vpack.c.bf16 %v1757_v25, %v1757_v25  ;;  %v1637_v0 = vmul.f32 %v2950_v5, %v3480_v32  ;;  %v1702_v63 = vadd.f32 %v2952_v6, %v1635_v35  ;;  %1883 = vst.msk [vmem:[%s3408_s4 + $0xb4] sm:$0xf] %vm1837_vm5, %v1818_v2 }
 0x24d   :  { %v1762_v61 = vmax.f32 %v1698_v30, 0.0  ;;  %v1822_v62 = vpack.c.bf16 %v1758_v13, %v1758_v13  ;;  %v1638_v42 = vmul.f32 %v2950_v5, %v3481_v14  ;;  %v1703_v23 = vadd.f32 %v2952_v6, %v1636_v44  ;;  %1884 = vst.msk [vmem:[%s3408_s4 + $0xb8] sm:$0xf] %vm1837_vm5, %v1819_v20 }
 0x24e   :  { %v1763_v36 = vmax.f32 %v1699_v34, 0.0  ;;  %v1823_v29 = vpack.c.bf16 %v1759_v52, %v1759_v52  ;;  %v1639_v51 = vmul.f32 %v2950_v5, %v3482_v33  ;;  %v1704_v3 = vadd.f32 %v2952_v6, %v1637_v0  ;;  %1885 = vst.msk [vmem:[%s3408_s4 + $0xbc] sm:$0xf] %vm1837_vm5, %v1820_v60 }
 0x24f   :  { %v1764_v45 = vmax.f32 %v1700_v37, 0.0  ;;  %v1824_v47 = vpack.c.bf16 %v1760_v43, %v1760_v43  ;;  %v1640_v58 = vmul.f32 %v2950_v5, %v3483_v17  ;;  %v1705_v55 = vadd.f32 %v2952_v6, %v1638_v42  ;;  %1886 = vst.msk [vmem:[%s3408_s4 + $0xc0] sm:$0xf] %vm1837_vm5, %v1821_v50 }
 0x250   :  { %v1765_v10 = vmax.f32 %v1701_v19, 0.0  ;;  %v1825_v21 = vpack.c.bf16 %v1761_v11, %v1761_v11  ;;  %v1706_v59 = vadd.f32 %v2952_v6, %v1639_v51  ;;  %v1766_v1 = vmax.f32 %v1702_v63, 0.0  ;;  %1887 = vst.msk [vmem:[%s3408_s4 + $0xc4] sm:$0xf] %vm1837_vm5, %v1822_v62 }
 0x251   :  { %v1826_v7 = vpack.c.bf16 %v1762_v61, %v1762_v61  ;;  %v1707_v5 = vadd.f32 %v2952_v6, %v1640_v58  ;;  %v1767_v27 = vmax.f32 %v1703_v23, 0.0  ;;  %v1827_v15 = vpack.c.bf16 %v1763_v36, %v1763_v36  ;;  %1888 = vst.msk [vmem:[%s3408_s4 + $0xc8] sm:$0xf] %vm1837_vm5, %v1823_v29 }
 0x252   :  { %v1768_v31 = vmax.f32 %v1704_v3, 0.0  ;;  %v1828_v18 = vpack.c.bf16 %v1764_v45, %v1764_v45  ;;  %1889 = vst.msk [vmem:[%s3408_s4 + $0xcc] sm:$0xf] %vm1837_vm5, %v1824_v47  ;;  %v1769_v28 = vmax.f32 %v1705_v55, 0.0  ;;  %v1829_v49 = vpack.c.bf16 %v1765_v10, %v1765_v10 }
 0x253   :  { %1890 = vst.msk [vmem:[%s3408_s4 + $0xd0] sm:$0xf] %vm1837_vm5, %v1825_v21  ;;  %v1770_v6 = vmax.f32 %v1706_v59, 0.0  ;;  %v1830_v40 = vpack.c.bf16 %v1766_v1, %v1766_v1  ;;  %v1771_v26 = vmax.f32 %v1707_v5, 0.0  ;;  %v1831_v39 = vpack.c.bf16 %v1767_v27, %v1767_v27 }
 0x254   :  { %1891 = vst.msk [vmem:[%s3408_s4 + $0xd4] sm:$0xf] %vm1837_vm5, %v1826_v7  ;;  %v1772_v57 = vmax.f32 %v2956_v41, 0.0  ;;  %v1832_v48 = vpack.c.bf16 %v1768_v31, %v1768_v31  ;;  %v1833_v38 = vpack.c.bf16 %v1769_v28, %v1769_v28 }
 0x255   :  { %1892 = vst.msk [vmem:[%s3408_s4 + $0xd8] sm:$0xf] %vm1837_vm5, %v1827_v15  ;;  %v1834_v46 = vpack.c.bf16 %v1770_v6, %v1770_v6  ;;  %v1835_v24 = vpack.c.bf16 %v1771_v26, %v1771_v26 }
 0x256   :  { %1893 = vst.msk [vmem:[%s3408_s4 + $0xdc] sm:$0xf] %vm1837_vm5, %v1828_v18  ;;  %v1836_v41 = vpack.c.bf16 %v1772_v57, %v1772_v57 }
 0x257   :  { %1894 = vst.msk [vmem:[%s3408_s4 + $0xe0] sm:$0xf] %vm1837_vm5, %v1829_v49 }
 0x258   :  { %1895 = vst.msk [vmem:[%s3408_s4 + $0xe4] sm:$0xf] %vm1837_vm5, %v1830_v40 }
 0x259   :  { %1896 = vst.msk [vmem:[%s3408_s4 + $0xe8] sm:$0xf] %vm1837_vm5, %v1831_v39 }
 0x25a   :  { %1897 = vst.msk [vmem:[%s3408_s4 + $0xec] sm:$0xf] %vm1837_vm5, %v1832_v48 }
 0x25b   :  { %1898 = vst.msk [vmem:[%s3408_s4 + $0xf0] sm:$0xf] %vm1837_vm5, %v1833_v38 }
 0x25c   :  { %1899 = vst.msk [vmem:[%s3408_s4 + $0xf4] sm:$0xf] %vm1837_vm5, %v1834_v46 }
 0x25d   :  { %1900 = vst.msk [vmem:[%s3408_s4 + $0xf8] sm:$0xf] %vm1837_vm5, %v1835_v24 }
 0x25e   :  { %1901 = vst.msk [vmem:[%s3408_s4 + $0xfc] sm:$0xf] %vm1837_vm5, %v1836_v41 }
 0x25f   :  { %1906 = vsyncpa [#allocation4], 1 }

</bundles_post_ra>
